<compile_context>
chip_gen: v5e
topology: v5e:2x2
jax: 0.10.0
libtpu: 0.0.40
codegen_flags: <defaults>
</compile_context>

<pallas_src>
import functools

import jax
import jax.numpy as jnp
from jax.experimental import pallas as pl
from jax.experimental.pallas import tpu as pltpu

HIDDEN = 256
LANE = 128


def _round_up(x, m):
    return ((x + m - 1) // m) * m


def _ngram_kernel(idx_ref, w1e_ref, b1_ref, w3_ref, b3_ref, out_ref,
                  *, context_size, n_real):
    # idx_ref : (C, TB, 1) int32  context indices, pre-offset by c*V
    # w1e_ref : (C*V, H)   bf16   fused  emb_table @ W1^T  table
    # b1_ref  : (1, H)     f32
    # w3_ref  : (H, NP)    bf16   linear3 weight, pre-transposed, zero-padded to NP lanes
    # b3_ref  : (1, NP)    f32
    # out_ref : (TB, NP)   f32    log-probs (padded lanes hold -inf; sliced off outside)
    tb = out_ref.shape[0]
    cv = w1e_ref.shape[0]

    # Single fused one-hot over the concatenated (C*V) axis: exactly C ones per row.
    cv_iota = jax.lax.broadcasted_iota(jnp.int32, (tb, cv), 1)
    onehot = jnp.zeros((tb, cv), jnp.float32)
    for c in range(context_size):
        onehot = onehot + (cv_iota == idx_ref[c]).astype(jnp.float32)

    # One K=C*V MXU matmul == sum_c emb[idx_c] @ W1_c^T  (exact gather: 0/1 in bf16).
    pre = jnp.dot(onehot.astype(jnp.bfloat16), w1e_ref[...],
                  preferred_element_type=jnp.float32)                 # (TB, H) f32
    h = jnp.maximum(pre + b1_ref[...], 0.0)                           # ReLU, f32

    # linear3 (output padded to a lane-dense multiple of 128)
    o = jnp.dot(h.astype(jnp.bfloat16), w3_ref[...],
                preferred_element_type=jnp.float32) + b3_ref[...]     # (TB, NP) f32

    # Mask padded logits to -inf so they contribute nothing to the log-softmax LSE.
    if n_real < o.shape[-1]:
        col = jax.lax.broadcasted_iota(jnp.int32, o.shape, 1)
        o = jnp.where(col < n_real, o, -jnp.inf)

    # numerically stable log_softmax along dim=1
    m = jnp.max(o, axis=-1, keepdims=True)
    shifted = o - m
    lse = jnp.log(jnp.sum(jnp.exp(shifted), axis=-1, keepdims=True))
    out_ref[...] = shifted - lse


def init_ngram_params(key, embedding_dim, context_size, hidden=HIDDEN):
    """Init PyTorch-style params; fuse / transpose / pad them ONCE (hoisted)."""
    k_emb, k_w1, k_b1, k_w3, k_b3 = jax.random.split(key, 5)
    vocab = embedding_dim  # nn.Embedding(embedding_dim, embedding_dim)

    # nn.Embedding default: N(0, 1)
    emb_table = jax.random.normal(k_emb, (vocab, embedding_dim), jnp.float32)

    # nn.Linear default: U(-1/sqrt(fan_in), 1/sqrt(fan_in))
    fan1 = context_size * embedding_dim
    lim1 = 1.0 / jnp.sqrt(jnp.float32(fan1))
    w1 = jax.random.uniform(k_w1, (hidden, fan1), jnp.float32, -lim1, lim1)
    b1 = jax.random.uniform(k_b1, (hidden,), jnp.float32, -lim1, lim1)

    lim3 = 1.0 / jnp.sqrt(jnp.float32(hidden))
    w3 = jax.random.uniform(k_w3, (embedding_dim, hidden), jnp.float32, -lim3, lim3)
    b3 = jax.random.uniform(k_b3, (embedding_dim,), jnp.float32, -lim3, lim3)

    # ---- kernel-layout params (built once at init, NOT in the per-call path) ----
    # Fold the embedding table into linear1:  W1E[c] = emb_table @ W1_c^T  (V, H),
    # stacked over c -> (C*V, H).  Gather+linear1 then collapses to one matmul.
    w1_t = w1.T                                                       # (C*E, H)
    w1e = jnp.concatenate(
        [emb_table @ w1_t[c * embedding_dim:(c + 1) * embedding_dim, :]
         for c in range(context_size)], axis=0)                       # (C*V, H) f32

    n_pad = _round_up(embedding_dim, LANE)
    w3_t_pad = jnp.zeros((hidden, n_pad), jnp.float32).at[:, :embedding_dim].set(w3.T)
    b3_pad = jnp.zeros((1, n_pad), jnp.float32).at[:, :embedding_dim].set(b3)

    return dict(
        # kernel operands (MXU operands stored bf16; biases stay f32)
        w1e_bf16=w1e.astype(jnp.bfloat16),           # (C*V, H)
        b1=b1.reshape(1, hidden),                    # (1, H)  f32
        w3_t_pad_bf16=w3_t_pad.astype(jnp.bfloat16), # (H, NP)
        b3_pad=b3_pad,                               # (1, NP) f32
        # raw copies for the pure-JAX references
        emb_table=emb_table, w1=w1, b1_raw=b1, w3=w3, b3_raw=b3,
        embedding_dim=embedding_dim, context_size=context_size,
        hidden=hidden, vocab=vocab,
    )


def _pick_tile_b(batch):
    """Fill the MXU M dim and guarantee >=2 grid steps (v7x megacore) when possible."""
    for t in (512, 256, 128):
        if batch >= 2 * t and batch % t == 0:
            return t
    if batch % 256 == 0:
        return 256
    return batch


def ngram_forward(indices, params, *, tile_b=None):
    """indices: (B, context_size) or (context_size,) int32.
    Returns (B, embedding_dim) log-probs (B=1 for a single context)."""
    indices = jnp.asarray(indices, jnp.int32)
    if indices.ndim == 1:
        indices = indices[None, :]
    batch, ctx = indices.shape
    assert ctx == params["context_size"]

    edim = params["embedding_dim"]
    hidden = params["hidden"]
    vocab = params["vocab"]
    n_pad = params["b3_pad"].shape[1]
    cv = ctx * vocab

    # Pre-offset indices (+c*V) and lay out as (C, B, 1): the kernel reads a
    # sublane-contiguous (TB,1) slab per context and builds one fused one-hot.
    offs = (jnp.arange(ctx, dtype=jnp.int32) * vocab)[None, :]
    idx_off = jnp.transpose(indices + offs)[:, :, None]               # (C, B, 1)

    if tile_b is None:
        tile_b = _pick_tile_b(batch)
    assert batch % tile_b == 0, "batch must be a multiple of the batch tile"
    assert tile_b == batch or tile_b % 8 == 0, "batch tile must be sublane-aligned"
    grid = (batch // tile_b,)

    kernel = functools.partial(_ngram_kernel, context_size=ctx, n_real=edim)

    # Advisory cost hint so XLA schedules surrounding ops around the custom call.
    cost = pl.CostEstimate(
        flops=2 * batch * (cv * hidden + hidden * n_pad),
        transcendentals=batch * (n_pad + 1),
        bytes_accessed=(batch * ctx * 4 + batch * n_pad * 4
                        + cv * hidden * 2 + hidden * 4
                        + hidden * n_pad * 2 + n_pad * 4),
    )

    cp_kwargs = {}
    if tile_b > 1024:
        # v5e's scoped-VMEM default (16 MiB) is the first to bind at huge tiles.
        cp_kwargs["vmem_limit_bytes"] = 64 * 1024 * 1024

    out_padded = pl.pallas_call(
        kernel,
        out_shape=jax.ShapeDtypeStruct((batch, n_pad), jnp.float32),
        grid_spec=pltpu.PrefetchScalarGridSpec(
            num_scalar_prefetch=0,
            grid=grid,
            in_specs=[
                pl.BlockSpec((ctx, tile_b, 1), lambda i: (0, i, 0)),   # indices (pre-offset)
                pl.BlockSpec((cv, hidden), lambda i: (0, 0)),          # fused emb@W1 (bf16)
                pl.BlockSpec((1, hidden), lambda i: (0, 0)),           # b1
                pl.BlockSpec((hidden, n_pad), lambda i: (0, 0)),       # w3_t_pad (bf16)
                pl.BlockSpec((1, n_pad), lambda i: (0, 0)),            # b3_pad
            ],
            out_specs=pl.BlockSpec((tile_b, n_pad), lambda i: (i, 0)),
        ),
        compiler_params=pltpu.CompilerParams(
            # Batch axis is embarrassingly parallel -> megacore sharding on v7x.
            dimension_semantics=("parallel",), **cp_kwargs),
        cost_estimate=cost,
    )(idx_off, params["w1e_bf16"], params["b1"],
      params["w3_t_pad_bf16"], params["b3_pad"])

    # Drop the zero-padded lanes (kernel store stays lane-dense / unmasked).
    return out_padded[:, :edim]


def ngram_reference_f32(indices, params):
    """Pure-JAX f32 reference matching the PyTorch forward, vectorized over rows."""
    indices = jnp.asarray(indices, jnp.int32)
    if indices.ndim == 1:
        indices = indices[None, :]
    emb = jnp.take(params["emb_table"], indices, axis=0)               # (B, C, E)
    x = emb.reshape(indices.shape[0], -1)                              # (B, C*E)
    h = jnp.maximum(x @ params["w1"].T + params["b1_raw"], 0.0)
    o = h @ params["w3"].T + params["b3_raw"]
    return jax.nn.log_softmax(o, axis=-1)


def ngram_reference_bf16(indices, params):
    """Kernel-equivalent reference: same bf16 operands / f32 accumulation via XLA."""
    indices = jnp.asarray(indices, jnp.int32)
    if indices.ndim == 1:
        indices = indices[None, :]
    ctx = params["context_size"]
    vocab = params["vocab"]
    edim = params["embedding_dim"]
    offs = (jnp.arange(ctx, dtype=jnp.int32) * vocab)[None, :]
    onehot = jax.nn.one_hot(indices + offs, ctx * vocab,
                            dtype=jnp.bfloat16).sum(axis=1)            # (B, C*V), exact 0/1
    pre = jnp.dot(onehot, params["w1e_bf16"], preferred_element_type=jnp.float32)
    h = jnp.maximum(pre + params["b1"], 0.0)
    o = jnp.dot(h.astype(jnp.bfloat16), params["w3_t_pad_bf16"],
                preferred_element_type=jnp.float32) + params["b3_pad"]
    return jax.nn.log_softmax(o[:, :edim], axis=-1)


if __name__ == "__main__":
    EMBEDDING_DIM = 64   # also the vocab size (nn.Embedding(embedding_dim, embedding_dim))
    CONTEXT_SIZE = 2
    BATCH = 512          # batch of contexts; tile_b=256 -> 2 parallel grid steps

    key = jax.random.PRNGKey(0)
    k_params, k_inputs = jax.random.split(key)

    params = init_ngram_params(k_params, EMBEDDING_DIM, CONTEXT_SIZE)
    contexts = jax.random.randint(
        k_inputs, (BATCH, CONTEXT_SIZE), 0, EMBEDDING_DIM, jnp.int32)

    log_probs = jax.block_until_ready(ngram_forward(contexts, params))

    # shape + normalization sanity
    assert log_probs.shape == (BATCH, EMBEDDING_DIM)
    prob_sums = jnp.sum(jnp.exp(log_probs), axis=-1)
    assert bool(jnp.all(jnp.abs(prob_sums - 1.0) < 1e-3)), prob_sums

    # tight check vs a kernel-equivalent (bf16 operand / f32 accumulate) reference
    ref_bf16 = ngram_reference_bf16(contexts, params)
    err_bf16 = float(jnp.max(jnp.abs(log_probs - ref_bf16)))
    assert err_bf16 < 1e-3, err_bf16

    # loose check vs the full-f32 PyTorch-semantics reference (bf16 MXU operands)
    ref_f32 = ngram_reference_f32(contexts, params)
    err_f32 = float(jnp.max(jnp.abs(log_probs - ref_f32)))
    assert err_f32 < 7.5e-2, err_f32

    # single-context path (the exact PyTorch forward signature: one context -> (1, E))
    single = jax.block_until_ready(ngram_forward(contexts[0], params))
    assert single.shape == (1, EMBEDDING_DIM)
    assert bool(jnp.allclose(single, log_probs[0:1], rtol=1e-4, atol=1e-4))

    print("KERNEL_OK")
</pallas_src>

<mosaic_0001>
module attributes {stable_mosaic.version = 11 : i64} {
  func.func @_ngram_kernel(%arg0: i32, %arg1: memref<2x256x1xi32, #tpu.memory_space<vmem>>, %arg2: memref<128x256xbf16, #tpu.memory_space<vmem>>, %arg3: memref<1x256xf32, #tpu.memory_space<vmem>>, %arg4: memref<256x128xbf16, #tpu.memory_space<vmem>>, %arg5: memref<1x128xf32, #tpu.memory_space<vmem>>, %arg6: memref<256x128xf32, #tpu.memory_space<vmem>>) attributes {dimension_semantics = [#tpu.dimension_semantics<parallel>], iteration_bounds = array<i64: 2>, scalar_prefetch = 0 : i64, scratch_operands = 0 : i64, tpu.core_type = #tpu.core_type<tc>, window_params = [{transform_indices = @transform_0, window_bounds = array<i64: 2, 256, 1>}, {pipeline_mode = #tpu.pipeline_mode<synchronous>, transform_indices = @transform_1, window_bounds = array<i64: 128, 256>}, {pipeline_mode = #tpu.pipeline_mode<synchronous>, transform_indices = @transform_2, window_bounds = array<i64: 1, 256>}, {pipeline_mode = #tpu.pipeline_mode<synchronous>, transform_indices = @transform_3, window_bounds = array<i64: 256, 128>}, {pipeline_mode = #tpu.pipeline_mode<synchronous>, transform_indices = @transform_4, window_bounds = array<i64: 1, 128>}, {transform_indices = @transform_5, window_bounds = array<i64: 256, 128>}]} {
    %0 = tpu.iota {dimensions = array<i32: 1>} : vector<256x128xi32>
    %cst = arith.constant 0.000000e+00 : f32
    %1 = vector.broadcast %cst : f32 to vector<256x128xf32>
    %c0 = arith.constant 0 : index
    %c0_0 = arith.constant 0 : index
    %c0_1 = arith.constant 0 : index
    %2 = vector.load %arg1[%c0, %c0_0, %c0_1] : memref<2x256x1xi32, #tpu.memory_space<vmem>>, vector<1x256x1xi32>
    %3 = vector.shape_cast %2 : vector<1x256x1xi32> to vector<256x1xi32>
    %4 = vector.broadcast %3 : vector<256x1xi32> to vector<256x128xi32>
    %5 = arith.cmpi eq, %0, %4 : vector<256x128xi32>
    %6 = arith.extui %5 : vector<256x128xi1> to vector<256x128xi32>
    %7 = arith.sitofp %6 : vector<256x128xi32> to vector<256x128xf32>
    %8 = arith.addf %1, %7 : vector<256x128xf32>
    %c1 = arith.constant 1 : index
    %c0_2 = arith.constant 0 : index
    %c0_3 = arith.constant 0 : index
    %9 = vector.load %arg1[%c1, %c0_2, %c0_3] : memref<2x256x1xi32, #tpu.memory_space<vmem>>, vector<1x256x1xi32>
    %10 = vector.shape_cast %9 : vector<1x256x1xi32> to vector<256x1xi32>
    %11 = vector.broadcast %10 : vector<256x1xi32> to vector<256x128xi32>
    %12 = arith.cmpi eq, %0, %11 : vector<256x128xi32>
    %13 = arith.extui %12 : vector<256x128xi1> to vector<256x128xi32>
    %14 = arith.sitofp %13 : vector<256x128xi32> to vector<256x128xf32>
    %15 = arith.addf %8, %14 : vector<256x128xf32>
    %16 = arith.truncf %15 : vector<256x128xf32> to vector<256x128xbf16>
    %c0_4 = arith.constant 0 : index
    %c0_5 = arith.constant 0 : index
    %17 = vector.load %arg2[%c0_4, %c0_5] : memref<128x256xbf16, #tpu.memory_space<vmem>>, vector<128x256xbf16>
    %cst_6 = arith.constant dense<0.000000e+00> : vector<256x256xf32>
    %18 = tpu.matmul %16, %17, %cst_6 {dimension_numbers = #tpu.dot_dimension_numbers<[1], [0], [0], [1], [0, 0, 1, 1], [], []>} : vector<256x128xbf16>, vector<128x256xbf16>, vector<256x256xf32> -> vector<256x256xf32>
    %c0_7 = arith.constant 0 : index
    %c0_8 = arith.constant 0 : index
    %19 = vector.load %arg3[%c0_7, %c0_8] : memref<1x256xf32, #tpu.memory_space<vmem>>, vector<1x256xf32>
    %20 = vector.broadcast %19 : vector<1x256xf32> to vector<256x256xf32>
    %21 = arith.addf %18, %20 : vector<256x256xf32>
    %cst_9 = arith.constant 0.000000e+00 : f32
    %22 = vector.broadcast %cst_9 : f32 to vector<256x256xf32>
    %23 = arith.maximumf %21, %22 : vector<256x256xf32>
    %24 = arith.truncf %23 : vector<256x256xf32> to vector<256x256xbf16>
    %c0_10 = arith.constant 0 : index
    %c0_11 = arith.constant 0 : index
    %25 = vector.load %arg4[%c0_10, %c0_11] : memref<256x128xbf16, #tpu.memory_space<vmem>>, vector<256x128xbf16>
    %cst_12 = arith.constant dense<0.000000e+00> : vector<256x128xf32>
    %26 = tpu.matmul %24, %25, %cst_12 {dimension_numbers = #tpu.dot_dimension_numbers<[1], [0], [0], [1], [0, 0, 1, 1], [], []>} : vector<256x256xbf16>, vector<256x128xbf16>, vector<256x128xf32> -> vector<256x128xf32>
    %c0_13 = arith.constant 0 : index
    %c0_14 = arith.constant 0 : index
    %27 = vector.load %arg5[%c0_13, %c0_14] : memref<1x128xf32, #tpu.memory_space<vmem>>, vector<1x128xf32>
    %28 = vector.broadcast %27 : vector<1x128xf32> to vector<256x128xf32>
    %29 = arith.addf %26, %28 : vector<256x128xf32>
    %30 = tpu.iota {dimensions = array<i32: 1>} : vector<256x128xi32>
    %c64_i32 = arith.constant 64 : i32
    %31 = vector.broadcast %c64_i32 : i32 to vector<256x128xi32>
    %32 = arith.cmpi slt, %30, %31 : vector<256x128xi32>
    %cst_15 = arith.constant 0xFF800000 : f32
    %33 = vector.broadcast %cst_15 : f32 to vector<256x128xf32>
    %34 = arith.select %32, %29, %33 : vector<256x128xi1>, vector<256x128xf32>
    %cst_16 = arith.constant dense<0xFF800000> : vector<256xf32>
    %35 = vector.multi_reduction <maximumf>, %34, %cst_16 [1] : vector<256x128xf32> to vector<256xf32>
    %36 = vector.shape_cast %35 : vector<256xf32> to vector<256x1xf32>
    %37 = vector.broadcast %36 : vector<256x1xf32> to vector<256x128xf32>
    %38 = arith.subf %34, %37 : vector<256x128xf32>
    %39 = math.exp %38 : vector<256x128xf32>
    %cst_17 = arith.constant dense<0.000000e+00> : vector<256xf32>
    %40 = vector.multi_reduction <add>, %39, %cst_17 [1] : vector<256x128xf32> to vector<256xf32>
    %41 = vector.shape_cast %40 : vector<256xf32> to vector<256x1xf32>
    %42 = math.log %41 : vector<256x1xf32>
    %43 = vector.broadcast %42 : vector<256x1xf32> to vector<256x128xf32>
    %44 = arith.subf %38, %43 : vector<256x128xf32>
    %c0_18 = arith.constant 0 : index
    %c0_19 = arith.constant 0 : index
    %45 = vector.load %arg6[%c0_18, %c0_19] : memref<256x128xf32, #tpu.memory_space<vmem>>, vector<256x128xf32>
    tpu.vector_store %arg6[%c0_18, %c0_19], %44 {strides = array<i32>} : memref<256x128xf32, #tpu.memory_space<vmem>>, vector<256x128xf32>,
    return
  }
  func.func @transform_0(%arg0: i32) -> (i32, i32, i32) {
    %c0_i32 = arith.constant 0 : i32
    %c0_i32_0 = arith.constant 0 : i32
    %c0_i32_1 = arith.constant 0 : i32
    return %c0_i32, %arg0, %c0_i32_0 : i32, i32, i32
  }
  func.func @transform_1(%arg0: i32) -> (i32, i32) {
    %c0_i32 = arith.constant 0 : i32
    %c0_i32_0 = arith.constant 0 : i32
    %c0_i32_1 = arith.constant 0 : i32
    return %c0_i32, %c0_i32_0 : i32, i32
  }
  func.func @transform_2(%arg0: i32) -> (i32, i32) {
    %c0_i32 = arith.constant 0 : i32
    %c0_i32_0 = arith.constant 0 : i32
    %c0_i32_1 = arith.constant 0 : i32
    return %c0_i32, %c0_i32_0 : i32, i32
  }
  func.func @transform_3(%arg0: i32) -> (i32, i32) {
    %c0_i32 = arith.constant 0 : i32
    %c0_i32_0 = arith.constant 0 : i32
    %c0_i32_1 = arith.constant 0 : i32
    return %c0_i32, %c0_i32_0 : i32, i32
  }
  func.func @transform_4(%arg0: i32) -> (i32, i32) {
    %c0_i32 = arith.constant 0 : i32
    %c0_i32_0 = arith.constant 0 : i32
    %c0_i32_1 = arith.constant 0 : i32
    return %c0_i32, %c0_i32_0 : i32, i32
  }
  func.func @transform_5(%arg0: i32) -> (i32, i32) {
    %c0_i32 = arith.constant 0 : i32
    %c0_i32_0 = arith.constant 0 : i32
    return %arg0, %c0_i32 : i32, i32
  }
}

</mosaic_0001>

<bundles_post_ra>
// kernel: tpu_custom_call.1
= control target key start
LH: loop header
LB: loop body
LE: loop exit
PB: predicated region body
PF: predicated region fallthrough
CT: control target
= control target key end

     0   :  { %10 = vsyncpa [#allocation4], 0  ;;  %s3775_s0 = inlined_call_operand.vmem [shape: s32[2,512,1], index: 0, kind: input, shape index: {}]   ;;  %s3776_s1 = inlined_call_operand.vmem [shape: bf16[128,256], index: 1, kind: input, shape index: {}]   ;;  %s3777_s2 = inlined_call_operand.vmem [shape: f32[1,256], index: 2, kind: input, shape index: {}]   ;;  %s3778_s3 = inlined_call_operand.vmem [shape: bf16[256,128], index: 3, kind: input, shape index: {}]   ;;  %s3779_s4 = inlined_call_operand.vmem [shape: f32[1,128], index: 4, kind: input, shape index: {}]   ;;  %s3780_s5 = inlined_call_operand.hbm [shape: f32[512,128], index: 5, kind: output, shape index: {}]  }
   0x1   :  { %12 = vsyncpa [#allocation4 + $0x1], 0  ;;  %s2744_s18 = smov 0   ;;  %s2746_s19 = smov 0  }
   0x2   :  { %s2748_s20 = smov 0   ;;  %s2750_s21 = smov 0  }
   0x3 LB: > { %s2198_s22 = sadd.s32 4294967295, %s2708_s21   ;;  %s2199_s23 = sadd.s32 4294967294, %s2708_s21   ;;  %s2708_s21 = sphi %s2750_s21, %s3786_s21   ;;  %s2704_s20 = sphi %s2748_s20, %s3785_s20   ;;  %s2700_s19 = sphi %s2746_s19, %s3784_s19   ;;  %s2696_s18 = sphi %s2744_s18, %s3783_s18  }
   0x4   : > { %s2767_s24 = sadd.s32 1, %s2708_s21   ;;  %s25_s25 = sadd.s32 1, %s2704_s20 }
   0x5   : > { %s22_s26 = ssub.s32 %s2708_s21, %s2767_s24  ;;  %p32_p0 = scmp.ne.s32.totalorder %s2704_s20, %s2700_s19 }
   0x6   : > { %p23_p1 = scmp.eq.s32.totalorder %s22_s26, 0  ;;  %p33_p2 = scmp.eq.s32.totalorder %s2708_s21, 0 }
   0x7   : > { %p146_p3 = scmp.eq.s32.totalorder %s2198_s22, 1  ;;  %p151_p4 = scmp.ne.s32.totalorder %s2700_s19, %s2696_s18 }
   0x8   : > { %s2780_s27 = scalar_select %p23_p1, %s2704_s20, %s25_s25  }
   0x9   : > { %p34_p5 = por %p33_p2, %p32_p0  ;;  %p2782_p6 = por %p146_p3, %p32_p0 }
   0xa   : > { %p152_p7 = scmp.eq.s32.totalorder %s2199_s23, 1  ;;  %p2201_p9 = scmp.ge.s32.totalorder %s2708_s21, 2 }
   0xc   : > { %p2786_p8 = por %p152_p7, %p151_p4  ;;  %180 = sbr.rel (%p2201_p9) target bundleno = 85 (0x55), region = 32 }
  0x11   : > { %183 = sbr.rel (!%p34_p5) target bundleno = 85 (0x55), region = 36  ;;  %s185_s30 = sand.u32 (%p34_p5), 1, %s2704_s20  }
  0x12   : > { %s2437_s6 = sshll.u32 (%p34_p5), %s2708_s21, 8  ;;  %s2202_s7 = sshll.u32 (%p34_p5), %s185_s30, 9 }
  0x13   : > { %s2798_s10 = scalar_lea.vmem (%p34_p5), %s3775_s0, %s2437_s6  ;;  %s2803_s11 = scalar_lea.vmem (%p34_p5), [#allocation2], %s2202_s7 }
  0x14   : > { %v345_v0 = vld [vmem:[%s2798_s10] sm:$0xff] (%p34_p5)  ;;  %v347_v1 = vld [vmem:[%s2798_s10 + $0x8] sm:$0xff] (%p34_p5)  ;;  %v349_v2 = vld [vmem:[%s2798_s10 + $0x10] sm:$0xff] (%p34_p5) }
  0x15   : > { %346 = vst [vmem:[%s2803_s11] sm:$0xff] (%p34_p5), %v345_v0  ;;  %v351_v3 = vld [vmem:[%s2798_s10 + $0x18] sm:$0xff] (%p34_p5)  ;;  %v353_v4 = vld [vmem:[%s2798_s10 + $0x20] sm:$0xff] (%p34_p5)  ;;  %v355_v5 = vld [vmem:[%s2798_s10 + $0x28] sm:$0xff] (%p34_p5) }
  0x16   : > { %348 = vst [vmem:[%s2803_s11 + $0x8] sm:$0xff] %v347_v1  ;;  %v357_v6 = vld [vmem:[%s2798_s10 + $0x30] sm:$0xff]  ;;  %v359_v7 = vld [vmem:[%s2798_s10 + $0x38] sm:$0xff]  ;;  %v361_v8 = vld [vmem:[%s2798_s10 + $0x40] sm:$0xff] }
  0x17   : > { %350 = vst [vmem:[%s2803_s11 + $0x10] sm:$0xff] %v349_v2  ;;  %v363_v9 = vld [vmem:[%s2798_s10 + $0x48] sm:$0xff]  ;;  %v365_v10 = vld [vmem:[%s2798_s10 + $0x50] sm:$0xff]  ;;  %v367_v11 = vld [vmem:[%s2798_s10 + $0x58] sm:$0xff] }
  0x18   : > { %352 = vst [vmem:[%s2803_s11 + $0x18] sm:$0xff] %v351_v3  ;;  %v369_v12 = vld [vmem:[%s2798_s10 + $0x60] sm:$0xff]  ;;  %v371_v13 = vld [vmem:[%s2798_s10 + $0x68] sm:$0xff]  ;;  %v373_v14 = vld [vmem:[%s2798_s10 + $0x70] sm:$0xff] }
  0x19   : > { %354 = vst [vmem:[%s2803_s11 + $0x20] sm:$0xff] %v353_v4  ;;  %v375_v15 = vld [vmem:[%s2798_s10 + $0x78] sm:$0xff]  ;;  %v377_v16 = vld [vmem:[%s2798_s10 + $0x80] sm:$0xff]  ;;  %v379_v17 = vld [vmem:[%s2798_s10 + $0x88] sm:$0xff] }
  0x1a   : > { %356 = vst [vmem:[%s2803_s11 + $0x28] sm:$0xff] %v355_v5  ;;  %v381_v18 = vld [vmem:[%s2798_s10 + $0x90] sm:$0xff]  ;;  %v383_v19 = vld [vmem:[%s2798_s10 + $0x98] sm:$0xff]  ;;  %v385_v20 = vld [vmem:[%s2798_s10 + $0xa0] sm:$0xff] }
  0x1b   : > { %358 = vst [vmem:[%s2803_s11 + $0x30] sm:$0xff] %v357_v6  ;;  %v387_v21 = vld [vmem:[%s2798_s10 + $0xa8] sm:$0xff]  ;;  %v389_v22 = vld [vmem:[%s2798_s10 + $0xb0] sm:$0xff]  ;;  %v391_v23 = vld [vmem:[%s2798_s10 + $0xb8] sm:$0xff] }
  0x1c   : > { %360 = vst [vmem:[%s2803_s11 + $0x38] sm:$0xff] %v359_v7  ;;  %v393_v24 = vld [vmem:[%s2798_s10 + $0xc0] sm:$0xff]  ;;  %v395_v25 = vld [vmem:[%s2798_s10 + $0xc8] sm:$0xff]  ;;  %v397_v26 = vld [vmem:[%s2798_s10 + $0xd0] sm:$0xff] }
  0x1d   : > { %362 = vst [vmem:[%s2803_s11 + $0x40] sm:$0xff] %v361_v8  ;;  %v399_v27 = vld [vmem:[%s2798_s10 + $0xd8] sm:$0xff]  ;;  %v401_v28 = vld [vmem:[%s2798_s10 + $0xe0] sm:$0xff]  ;;  %v403_v29 = vld [vmem:[%s2798_s10 + $0xe8] sm:$0xff] }
  0x1e   : > { %364 = vst [vmem:[%s2803_s11 + $0x48] sm:$0xff] %v363_v9  ;;  %v405_v30 = vld [vmem:[%s2798_s10 + $0xf0] sm:$0xff]  ;;  %v407_v31 = vld [vmem:[%s2798_s10 + $0xf8] sm:$0xff]  ;;  %v409_v32 = vld [vmem:[%s2798_s10 + $0x200] sm:$0xff] }
  0x1f   : > { %366 = vst [vmem:[%s2803_s11 + $0x50] sm:$0xff] %v365_v10  ;;  %v411_v33 = vld [vmem:[%s2798_s10 + $0x208] sm:$0xff]  ;;  %v413_v34 = vld [vmem:[%s2798_s10 + $0x210] sm:$0xff]  ;;  %v415_v35 = vld [vmem:[%s2798_s10 + $0x218] sm:$0xff] }
  0x20   : > { %368 = vst [vmem:[%s2803_s11 + $0x58] sm:$0xff] %v367_v11  ;;  %v417_v36 = vld [vmem:[%s2798_s10 + $0x220] sm:$0xff]  ;;  %v419_v37 = vld [vmem:[%s2798_s10 + $0x228] sm:$0xff]  ;;  %v421_v38 = vld [vmem:[%s2798_s10 + $0x230] sm:$0xff] }
  0x21   : > { %370 = vst [vmem:[%s2803_s11 + $0x60] sm:$0xff] %v369_v12  ;;  %v423_v39 = vld [vmem:[%s2798_s10 + $0x238] sm:$0xff]  ;;  %v425_v40 = vld [vmem:[%s2798_s10 + $0x240] sm:$0xff]  ;;  %v427_v41 = vld [vmem:[%s2798_s10 + $0x248] sm:$0xff] }
  0x22   : > { %372 = vst [vmem:[%s2803_s11 + $0x68] sm:$0xff] %v371_v13  ;;  %v429_v42 = vld [vmem:[%s2798_s10 + $0x250] sm:$0xff]  ;;  %v431_v43 = vld [vmem:[%s2798_s10 + $0x258] sm:$0xff]  ;;  %v433_v44 = vld [vmem:[%s2798_s10 + $0x260] sm:$0xff] }
  0x23   : > { %374 = vst [vmem:[%s2803_s11 + $0x70] sm:$0xff] %v373_v14  ;;  %v435_v45 = vld [vmem:[%s2798_s10 + $0x268] sm:$0xff]  ;;  %v437_v46 = vld [vmem:[%s2798_s10 + $0x270] sm:$0xff]  ;;  %v439_v47 = vld [vmem:[%s2798_s10 + $0x278] sm:$0xff] }
  0x24   : > { %376 = vst [vmem:[%s2803_s11 + $0x78] sm:$0xff] %v375_v15  ;;  %v441_v48 = vld [vmem:[%s2798_s10 + $0x280] sm:$0xff]  ;;  %v443_v49 = vld [vmem:[%s2798_s10 + $0x288] sm:$0xff]  ;;  %v445_v50 = vld [vmem:[%s2798_s10 + $0x290] sm:$0xff] }
  0x25   : > { %378 = vst [vmem:[%s2803_s11 + $0x80] sm:$0xff] %v377_v16  ;;  %v447_v51 = vld [vmem:[%s2798_s10 + $0x298] sm:$0xff]  ;;  %v449_v52 = vld [vmem:[%s2798_s10 + $0x2a0] sm:$0xff]  ;;  %v451_v53 = vld [vmem:[%s2798_s10 + $0x2a8] sm:$0xff] }
  0x26   : > { %380 = vst [vmem:[%s2803_s11 + $0x88] sm:$0xff] %v379_v17  ;;  %v453_v54 = vld [vmem:[%s2798_s10 + $0x2b0] sm:$0xff]  ;;  %v455_v55 = vld [vmem:[%s2798_s10 + $0x2b8] sm:$0xff]  ;;  %v457_v56 = vld [vmem:[%s2798_s10 + $0x2c0] sm:$0xff] }
  0x27   : > { %382 = vst [vmem:[%s2803_s11 + $0x90] sm:$0xff] %v381_v18  ;;  %v459_v57 = vld [vmem:[%s2798_s10 + $0x2c8] sm:$0xff]  ;;  %v461_v58 = vld [vmem:[%s2798_s10 + $0x2d0] sm:$0xff]  ;;  %v463_v59 = vld [vmem:[%s2798_s10 + $0x2d8] sm:$0xff] }
  0x28   : > { %384 = vst [vmem:[%s2803_s11 + $0x98] sm:$0xff] %v383_v19  ;;  %v465_v60 = vld [vmem:[%s2798_s10 + $0x2e0] sm:$0xff]  ;;  %v467_v61 = vld [vmem:[%s2798_s10 + $0x2e8] sm:$0xff]  ;;  %v469_v62 = vld [vmem:[%s2798_s10 + $0x2f0] sm:$0xff] }
  0x29   : > { %386 = vst [vmem:[%s2803_s11 + $0xa0] sm:$0xff] %v385_v20  ;;  %v471_v63 = vld [vmem:[%s2798_s10 + $0x2f8] sm:$0xff] }
  0x2a   : > { %388 = vst [vmem:[%s2803_s11 + $0xa8] sm:$0xff] %v387_v21 }
  0x2b   : > { %390 = vst [vmem:[%s2803_s11 + $0xb0] sm:$0xff] %v389_v22 }
  0x2c   : > { %392 = vst [vmem:[%s2803_s11 + $0xb8] sm:$0xff] %v391_v23 }
  0x2d   : > { %394 = vst [vmem:[%s2803_s11 + $0xc0] sm:$0xff] %v393_v24 }
  0x2e   : > { %396 = vst [vmem:[%s2803_s11 + $0xc8] sm:$0xff] %v395_v25 }
  0x2f   : > { %398 = vst [vmem:[%s2803_s11 + $0xd0] sm:$0xff] %v397_v26 }
  0x30   : > { %400 = vst [vmem:[%s2803_s11 + $0xd8] sm:$0xff] %v399_v27 }
  0x31   : > { %402 = vst [vmem:[%s2803_s11 + $0xe0] sm:$0xff] %v401_v28 }
  0x32   : > { %404 = vst [vmem:[%s2803_s11 + $0xe8] sm:$0xff] %v403_v29 }
  0x33   : > { %406 = vst [vmem:[%s2803_s11 + $0xf0] sm:$0xff] %v405_v30 }
  0x34   : > { %408 = vst [vmem:[%s2803_s11 + $0xf8] sm:$0xff] %v407_v31 }
  0x35   : > { %410 = vst [vmem:[%s2803_s11 + $0x100] sm:$0xff] %v409_v32 }
  0x36   : > { %412 = vst [vmem:[%s2803_s11 + $0x108] sm:$0xff] %v411_v33 }
  0x37   : > { %414 = vst [vmem:[%s2803_s11 + $0x110] sm:$0xff] %v413_v34 }
  0x38   : > { %416 = vst [vmem:[%s2803_s11 + $0x118] sm:$0xff] %v415_v35 }
  0x39   : > { %418 = vst [vmem:[%s2803_s11 + $0x120] sm:$0xff] %v417_v36 }
  0x3a   : > { %420 = vst [vmem:[%s2803_s11 + $0x128] sm:$0xff] %v419_v37 }
  0x3b   : > { %422 = vst [vmem:[%s2803_s11 + $0x130] sm:$0xff] %v421_v38 }
  0x3c   : > { %424 = vst [vmem:[%s2803_s11 + $0x138] sm:$0xff] %v423_v39 }
  0x3d   : > { %426 = vst [vmem:[%s2803_s11 + $0x140] sm:$0xff] %v425_v40 }
  0x3e   : > { %428 = vst [vmem:[%s2803_s11 + $0x148] sm:$0xff] %v427_v41 }
  0x3f   : > { %430 = vst [vmem:[%s2803_s11 + $0x150] sm:$0xff] %v429_v42 }
  0x40   : > { %432 = vst [vmem:[%s2803_s11 + $0x158] sm:$0xff] %v431_v43 }
  0x41   : > { %434 = vst [vmem:[%s2803_s11 + $0x160] sm:$0xff] %v433_v44 }
  0x42   : > { %436 = vst [vmem:[%s2803_s11 + $0x168] sm:$0xff] %v435_v45 }
  0x43   : > { %438 = vst [vmem:[%s2803_s11 + $0x170] sm:$0xff] %v437_v46 }
  0x44   : > { %440 = vst [vmem:[%s2803_s11 + $0x178] sm:$0xff] %v439_v47 }
  0x45   : > { %442 = vst [vmem:[%s2803_s11 + $0x180] sm:$0xff] %v441_v48 }
  0x46   : > { %444 = vst [vmem:[%s2803_s11 + $0x188] sm:$0xff] %v443_v49 }
  0x47   : > { %446 = vst [vmem:[%s2803_s11 + $0x190] sm:$0xff] %v445_v50 }
  0x48   : > { %448 = vst [vmem:[%s2803_s11 + $0x198] sm:$0xff] %v447_v51 }
  0x49   : > { %450 = vst [vmem:[%s2803_s11 + $0x1a0] sm:$0xff] %v449_v52 }
  0x4a   : > { %452 = vst [vmem:[%s2803_s11 + $0x1a8] sm:$0xff] %v451_v53 }
  0x4b   : > { %454 = vst [vmem:[%s2803_s11 + $0x1b0] sm:$0xff] %v453_v54 }
  0x4c   : > { %456 = vst [vmem:[%s2803_s11 + $0x1b8] sm:$0xff] %v455_v55 }
  0x4d   : > { %458 = vst [vmem:[%s2803_s11 + $0x1c0] sm:$0xff] %v457_v56 }
  0x4e   : > { %460 = vst [vmem:[%s2803_s11 + $0x1c8] sm:$0xff] %v459_v57 }
  0x4f   : > { %462 = vst [vmem:[%s2803_s11 + $0x1d0] sm:$0xff] %v461_v58 }
  0x50   : > { %464 = vst [vmem:[%s2803_s11 + $0x1d8] sm:$0xff] %v463_v59 }
  0x51   : > { %466 = vst [vmem:[%s2803_s11 + $0x1e0] sm:$0xff] %v465_v60 }
  0x52   : > { %468 = vst [vmem:[%s2803_s11 + $0x1e8] sm:$0xff] %v467_v61 }
  0x53   : > { %470 = vst [vmem:[%s2803_s11 + $0x1f0] sm:$0xff] %v469_v62 }
  0x54   : > { %472 = vst [vmem:[%s2803_s11 + $0x1f8] sm:$0xff] %v471_v63 }
  0x55 PF: > { %p2205_p10 = scmp.ge.s32.totalorder %s2708_s21, 1  ;;  %p477_p11 = scmp.lt.s32.totalorder %s2708_s21, 3 }
  0x57   : > { %p478_p12 = pnand %p2205_p10, %p477_p11 }
  0x58   : > { %s2933_s12 = sand.u32 (!%p478_p12), 1, %s2700_s19   ;;  %s2470_s16 = sshll.u32 (!%p478_p12), %s2198_s22, 8 }
  0x59   : > { %481 = sbr.rel (%p478_p12) target bundleno = 1009 (0x3f1), region = 74  ;;  %s2206_s13 = sshll.u32 (!%p478_p12), %s2933_s12, 9 }
  0x5a   : > { %s2936_s14 = scalar_lea.vmem (!%p478_p12), [#allocation2], %s2206_s13  ;;  %s2207_s13 = sshll.u32 (!%p478_p12), %s2933_s12, 8 }
  0x5b   : > { %s3615_s15 = scalar_lea.vmem (!%p478_p12), [#allocation3], %s2207_s13  ;;  %s2127_s25 = scalar_lea.hbm (!%p478_p12), %s3780_s5, %s2470_s16 }
  0x5c   : > { %s2128_s26 = sshll.u32 (!%p478_p12), %s3615_s15, 4  ;;  %s2130_s30 = sshll.u32 (!%p478_p12), %s2127_s25, 4  ;;  %s2129_s26 = int_to_ptr.vmem [resolvable:$true] %s2128_s26  ;;  %s2131_s30 = int_to_ptr.hbm [resolvable:$true] %s2130_s30 }
  0x5d   : > { %s2116_s6 = scalar_lea.sflag (!%p478_p12), [#allocation4], %s2933_s12  ;;  %s2660_s22 = sshra.s32 (!%p478_p12), %s2131_s30, 4  ;;  %s2661_s22 = int_to_ptr.hbm [resolvable:$true] %s2660_s22 }
  0x5e   : > { %v2710_v0 = vmov 0   ;;  %v2240_v1 = vld [vmem:[%s2936_s14 + $0x100] sm:$0xff]  ;;  %v517_v2 = vld [vmem:[%s2936_s14 + $0x10] sm:$0xff]  ;;  %v2241_v4 = vld [vmem:[%s2936_s14 + $0x108] sm:$0xff]  ;;  %s2666_s9 = scalar_lea.hbm %s3780_s5, 512  ;;  %p2667_p2 = scmp.lt.s32.totalorder %s2661_s22, %s3780_s5 }
  0x5f   : > { %2516 = vset.pattern.permute.xlu2 %v2710_v0  ;;  %2515 = vset.pattern.permute.xlu1 %v2710_v0  ;;  %v515_v3 = vld [vmem:[%s2936_s14] sm:$0xff]  ;;  %v518_v5 = vld [vmem:[%s2936_s14 + $0x18] sm:$0xff]  ;;  %v516_v6 = vld [vmem:[%s2936_s14 + $0x8] sm:$0xff] }
  0x60   : > { %2514 = vset.pattern.permute.xlu0 %v2710_v0  ;;  %805 = vperm.xlu1 %2515, %v2240_v1   ;;  %v2243_v7 = vld [vmem:[%s2936_s14 + $0x118] sm:$0xff]  ;;  %v519_v8 = vld [vmem:[%s2936_s14 + $0x20] sm:$0xff]  ;;  %v2242_v9 = vld [vmem:[%s2936_s14 + $0x110] sm:$0xff] }
  0x61   : > { %554 = vperm.xlu2 %2516, %v517_v2   ;;  %548 = vperm.xlu0 %2514, %v515_v3   ;;  %v2244_v10 = vld [vmem:[%s2936_s14 + $0x120] sm:$0xff]  ;;  %v2245_v11 = vld [vmem:[%s2936_s14 + $0x128] sm:$0xff]  ;;  %v522_v13 = vld [vmem:[%s2936_s14 + $0x38] sm:$0xff] }
  0x62   : > { %v520_v12 = vld [vmem:[%s2936_s14 + $0x28] sm:$0xff]  ;;  %v2246_v14 = vld [vmem:[%s2936_s14 + $0x130] sm:$0xff]  ;;  %v523_v16 = vld [vmem:[%s2936_s14 + $0x40] sm:$0xff] }
  0x63   : > { %v521_v15 = vld [vmem:[%s2936_s14 + $0x30] sm:$0xff]  ;;  %v524_v17 = vld [vmem:[%s2936_s14 + $0x48] sm:$0xff]  ;;  %v2247_v18 = vld [vmem:[%s2936_s14 + $0x138] sm:$0xff] }
  0x64   : > { %v2249_v19 = vld [vmem:[%s2936_s14 + $0x148] sm:$0xff]  ;;  %v525_v20 = vld [vmem:[%s2936_s14 + $0x50] sm:$0xff]  ;;  %v2248_v21 = vld [vmem:[%s2936_s14 + $0x140] sm:$0xff] }
  0x65   : > { %v2250_v22 = vld [vmem:[%s2936_s14 + $0x150] sm:$0xff]  ;;  %v2251_v23 = vld [vmem:[%s2936_s14 + $0x158] sm:$0xff]  ;;  %v528_v25 = vld [vmem:[%s2936_s14 + $0x68] sm:$0xff] }
  0x66   : > { %v526_v24 = vld [vmem:[%s2936_s14 + $0x58] sm:$0xff]  ;;  %v2252_v26 = vld [vmem:[%s2936_s14 + $0x160] sm:$0xff]  ;;  %v2362_v28 = vld [vmem:[%s3776_s1 + $0x70] sm:$0xf] }
  0x67   : > { %v527_v27 = vld [vmem:[%s2936_s14 + $0x60] sm:$0xff]  ;;  %v2453_v29 = vld [vmem:[%s3776_s1 + $0x74] sm:$0xf0]  ;;  %v2452_v30 = vld [vmem:[%s3776_s1 + $0x74] sm:$0xf] }
  0x68   : > { %808 = vperm.xlu1 %2515, %v2241_v4   ;;  %v2364_v31 = vld [vmem:[%s3776_s1 + $0x78] sm:$0xf0]  ;;  %v2363_v32 = vor.u32 %v2453_v29, %v2362_v28  ;;  %v2354_v34 = vld [vmem:[%s3776_s1 + $0x60] sm:$0xf]  ;;  %v2451_v35 = vld [vmem:[%s3776_s1 + $0x64] sm:$0xf0] }
  0x69   : > { %557 = vperm.xlu2 %2516, %v518_v5   ;;  %551 = vperm.xlu0 %2514, %v516_v6   ;;  %v2367_v33 = vor.u32 %v2452_v30, %v2364_v31  ;;  %v2450_v36 = vld [vmem:[%s3776_s1 + $0x64] sm:$0xf]  ;;  %v529_v37 = vld [vmem:[%s2936_s14 + $0x70] sm:$0xff]  ;;  %v530_v38 = vld [vmem:[%s2936_s14 + $0x78] sm:$0xff]  ;;  %v2355_v39 = vor.u32 %v2451_v35, %v2354_v34  ;;  %v513_v30 = vlaneseq }
  0x6a   : > { %1146 = vmatpush.bf16.msra.mxu0 %v2363_v32  ;;  %v2356_v40 = vld [vmem:[%s3776_s1 + $0x68] sm:$0xf0]  ;;  %v2346_v43 = vld [vmem:[%s3776_s1 + $0x50] sm:$0xf]  ;;  %v2449_v44 = vld [vmem:[%s3776_s1 + $0x54] sm:$0xf0] }
  0x6b   : > { %1235 = vmatpush.bf16.msra.mxu1 %v2367_v33  ;;  %v2253_v41 = vld [vmem:[%s2936_s14 + $0x168] sm:$0xff]  ;;  %v2359_v42 = vor.u32 %v2450_v36, %v2356_v40  ;;  %v2448_v45 = vld [vmem:[%s3776_s1 + $0x54] sm:$0xf]  ;;  %v2348_v46 = vld [vmem:[%s3776_s1 + $0x58] sm:$0xf0]  ;;  %v2347_v47 = vor.u32 %v2449_v44, %v2346_v43  ;;  %v3079_v33 = vand.u32 127, %v513_v30 }
  0x6c   : > { %v2351_v48 = vor.u32 %v2448_v45, %v2348_v46  ;;  %v2338_v49 = vld [vmem:[%s3776_s1 + $0x40] sm:$0xf]  ;;  %v2447_v50 = vld [vmem:[%s3776_s1 + $0x44] sm:$0xf0]  ;;  %v2446_v51 = vld [vmem:[%s3776_s1 + $0x44] sm:$0xf] }
  0x6d   : > { %v2255_v52 = vld [vmem:[%s2936_s14 + $0x178] sm:$0xff]  ;;  %v531_v53 = vld [vmem:[%s2936_s14 + $0x80] sm:$0xff]  ;;  %v2339_v54 = vor.u32 %v2447_v50, %v2338_v49  ;;  %v2340_v55 = vld [vmem:[%s3776_s1 + $0x48] sm:$0xf0] }
  0x6e   : > { %1147 = vmatpush.bf16.msra.mxu0 %v2355_v39  ;;  %v2254_v56 = vld [vmem:[%s2936_s14 + $0x170] sm:$0xff]  ;;  %v2343_v57 = vor.u32 %v2446_v51, %v2340_v55  ;;  %v2445_v59 = vld [vmem:[%s3776_s1 + $0x34] sm:$0xf0]  ;;  %v2332_v61 = vld [vmem:[%s3776_s1 + $0x38] sm:$0xf0]  ;;  %v2711_v39 = vmov 0.0  }
  0x6f   : > { %1236 = vmatpush.bf16.msra.mxu1 %v2359_v42  ;;  %v2330_v58 = vld [vmem:[%s3776_s1 + $0x30] sm:$0xf]  ;;  %v2444_v60 = vld [vmem:[%s3776_s1 + $0x34] sm:$0xf]  ;;  %v2322_v0 = vld [vmem:[%s3776_s1 + $0x20] sm:$0xf] }
  0x70   : > { %814 = vperm.xlu1 %2515, %v2243_v7   ;;  %v2331_v62 = vor.u32 %v2445_v59, %v2330_v58  ;;  %v2335_v63 = vor.u32 %v2444_v60, %v2332_v61  ;;  %v2443_v1 = vld [vmem:[%s3776_s1 + $0x24] sm:$0xf0]  ;;  %v2442_v2 = vld [vmem:[%s3776_s1 + $0x24] sm:$0xf]  ;;  %v2324_v6 = vld [vmem:[%s3776_s1 + $0x28] sm:$0xf0] }
  0x71   : > { %560 = vperm.xlu2 %2516, %v519_v8   ;;  %811 = vperm.xlu0 %2514, %v2242_v9   ;;  %v2256_v3 = vld [vmem:[%s2936_s14 + $0x180] sm:$0xff]  ;;  %v2257_v4 = vld [vmem:[%s2936_s14 + $0x188] sm:$0xff]  ;;  %v2323_v5 = vor.u32 %v2443_v1, %v2322_v0  ;;  %v2327_v8 = vor.u32 %v2442_v2, %v2324_v6  ;;  %v2314_v9 = vld [vmem:[%s3776_s1 + $0x10] sm:$0xf] }
  0x72   : > { %1148 = vmatpush.bf16.msra.mxu0 %v2347_v47  ;;  %v532_v7 = vld [vmem:[%s2936_s14 + $0x88] sm:$0xff]  ;;  %v537_v28 = vld [vmem:[%s2936_s14 + $0xb0] sm:$0xff]  ;;  %v2260_v29 = vld [vmem:[%s2936_s14 + $0x1a0] sm:$0xff] }
  0x73   : > { %1237 = vmatpush.bf16.msra.mxu1 %v2351_v48  ;;  %v2262_v34 = vld [vmem:[%s2936_s14 + $0x1b0] sm:$0xff]  ;;  %v2263_v35 = vld [vmem:[%s2936_s14 + $0x1b8] sm:$0xff]  ;;  %v540_v45 = vld [vmem:[%s2936_s14 + $0xc8] sm:$0xff] }
  0x74   : > { %v538_v36 = vld [vmem:[%s2936_s14 + $0xb8] sm:$0xff]  ;;  %v2264_v46 = vld [vmem:[%s2936_s14 + $0x1c0] sm:$0xff]  ;;  %v2266_v2 = vld [vmem:[%s2936_s14 + $0x1d0] sm:$0xff] }
  0x75   : > { %v539_v49 = vld [vmem:[%s2936_s14 + $0xc0] sm:$0xff]  ;;  %v542_v55 = vld [vmem:[%s2936_s14 + $0xd8] sm:$0xff] }
  0x76   : > { %1149 = vmatpush.bf16.msra.mxu0 %v2339_v54  ;;  %v541_v54 = vld [vmem:[%s2936_s14 + $0xd0] sm:$0xff]  ;;  %v2267_v0 = vld [vmem:[%s2936_s14 + $0x1d8] sm:$0xff]  ;;  %v543_v1 = vld [vmem:[%s2936_s14 + $0xe0] sm:$0xff] }
  0x77   : > { %1238 = vmatpush.bf16.msra.mxu1 %v2343_v57  ;;  %v2268_v6 = vld [vmem:[%s2936_s14 + $0x1e0] sm:$0xff] }
  0x78   : > { %817 = vperm.xlu1 %2515, %v2244_v10   ;;  %v2441_v10 = vld [vmem:[%s3776_s1 + $0x14] sm:$0xf0] }
  0x79   : > { %820 = vperm.xlu2 %2516, %v2245_v11   ;;  %563 = vperm.xlu0 %2514, %v520_v12   ;;  %v2440_v11 = vld [vmem:[%s3776_s1 + $0x14] sm:$0xf]  ;;  %v2316_v12 = vld [vmem:[%s3776_s1 + $0x18] sm:$0xf0] }
  0x7a   : > { %1150 = vmatpush.bf16.msra.mxu0 %v2331_v62 }
  0x7b   : > { %1239 = vmatpush.bf16.msra.mxu1 %v2335_v63 }
  0x7e   : > { %1151 = vmatpush.bf16.msra.mxu0 %v2323_v5 }
  0x7f   : > { %1240 = vmatpush.bf16.msra.mxu1 %v2327_v8  ;;  %v544_v8 = vld [vmem:[%s2936_s14 + $0xe8] sm:$0xff] }
  0x80   : > { %569 = vperm.xlu1 %2515, %v522_v13   ;;  %v2315_v13 = vor.u32 %v2441_v10, %v2314_v9 }
  0x81   : > { %823 = vperm.xlu2 %2516, %v2246_v14   ;;  %566 = vperm.xlu0 %2514, %v521_v15   ;;  %v2319_v14 = vor.u32 %v2440_v11, %v2316_v12  ;;  %v534_v15 = vld [vmem:[%s2936_s14 + $0x98] sm:$0xff] }
  0x82   : > { %1152 = vmatpush.bf16.msra.mxu0 %v2315_v13 }
  0x83   : > { %1241 = vmatpush.bf16.msra.mxu1 %v2319_v14 }
  0x88   : > { %572 = vperm.xlu1 %2515, %v523_v16   ;;  %v2306_v16 = vld [vmem:[%s3776_s1] sm:$0xf] }
  0x89   : > { %575 = vperm.xlu2 %2516, %v524_v17   ;;  %826 = vperm.xlu0 %2514, %v2247_v18   ;;  %v2439_v17 = vld [vmem:[%s3776_s1 + $0x4] sm:$0xf0]  ;;  %v2258_v18 = vld [vmem:[%s2936_s14 + $0x190] sm:$0xff] }
  0x90   : > { %832 = vperm.xlu1 %2515, %v2249_v19   ;;  %v2307_v19 = vor.u32 %v2439_v17, %v2306_v16  ;;  %v546_v17 = vld [vmem:[%s2936_s14 + $0xf8] sm:$0xff] }
  0x91   : > { %578 = vperm.xlu2 %2516, %v525_v20   ;;  %829 = vperm.xlu0 %2514, %v2248_v21   ;;  %v2438_v20 = vld [vmem:[%s3776_s1 + $0x4] sm:$0xf]  ;;  %v2308_v21 = vld [vmem:[%s3776_s1 + $0x8] sm:$0xf0] }
  0x92   : > { %1153 = vmatpush.bf16.msra.mxu0 %v2307_v19  ;;  %v545_v19 = vld [vmem:[%s2936_s14 + $0xf0] sm:$0xff] }
  0x98   : > { %835 = vperm.xlu1 %2515, %v2250_v22   ;;  %v533_v22 = vld [vmem:[%s2936_s14 + $0x90] sm:$0xff] }
  0x99   : > { %838 = vperm.xlu2 %2516, %v2251_v23   ;;  %581 = vperm.xlu0 %2514, %v526_v24   ;;  %v2311_v23 = vor.u32 %v2438_v20, %v2308_v21  ;;  %v535_v24 = vld [vmem:[%s2936_s14 + $0xa0] sm:$0xff] }
  0x9b   : > { %1242 = vmatpush.bf16.msra.mxu1 %v2311_v23  ;;  %v2271_v23 = vld [vmem:[%s2936_s14 + $0x1f8] sm:$0xff] }
  0xa0   : > { %587 = vperm.xlu1 %2515, %v528_v25   ;;  %v536_v25 = vld [vmem:[%s2936_s14 + $0xa8] sm:$0xff] }
  0xa1   : > { %841 = vperm.xlu2 %2516, %v2252_v26   ;;  %584 = vperm.xlu0 %2514, %v527_v27   ;;  %v2259_v26 = vld [vmem:[%s2936_s14 + $0x198] sm:$0xff]  ;;  %v2261_v27 = vld [vmem:[%s2936_s14 + $0x1a8] sm:$0xff] }
  0xa8   : > { %590 = vperm.xlu1 %2515, %v529_v37  }
  0xa9   : > { %593 = vperm.xlu2 %2516, %v530_v38   ;;  %844 = vperm.xlu0 %2514, %v2253_v41  }
  0xb0   : > { %850 = vperm.xlu1 %2515, %v2255_v52  }
  0xb1   : > { %596 = vperm.xlu2 %2516, %v531_v53   ;;  %847 = vperm.xlu0 %2514, %v2254_v56   ;;  %v2265_v56 = vld [vmem:[%s2936_s14 + $0x1c8] sm:$0xff] }
  0xb8   : > { %853 = vperm.xlu1 %2515, %v2256_v3  }
  0xb9   : > { %856 = vperm.xlu2 %2516, %v2257_v4   ;;  %599 = vperm.xlu0 %2514, %v532_v7   ;;  %v2269_v7 = vld [vmem:[%s2936_s14 + $0x1e8] sm:$0xff] }
  0xbb   : > { %v555_v37 = vpop.permute.xlu2 %554 }
  0xbc   : > { %vm645_vm4 = vcmp.eq.s32.totalorder %v3079_v33, %v555_v37 }
  0xbd   : > { %v2210_v57 = vsel %vm645_vm4, 1.0, %v2711_v39 }
  0xc0   : > { %605 = vperm.xlu1 %2515, %v534_v15  }
  0xc1   : > { %859 = vperm.xlu2 %2516, %v2258_v18   ;;  %602 = vperm.xlu0 %2514, %v533_v22   ;;  %v2270_v18 = vld [vmem:[%s2936_s14 + $0x1f0] sm:$0xff]  ;;  %s2662_s14 = scalar_lea.hbm %s2661_s22, 256 }
  0xc2   : > { %p2663_p13 = scmp.ne.s32.totalorder %s2661_s22, %s2662_s14  ;;  %p2668_p3 = scmp.lt.s32.totalorder %s2666_s9, %s2662_s14 }
  0xc3   : > { %v558_v51 = vpop.permute.xlu2 %557 }
  0xc4   : > { %vm646_vm5 = vcmp.eq.s32.totalorder %v3079_v33, %v558_v51  ;;  %p2664_p0 = pnand %p2663_p13, %p2782_p6  ;;  %p2669_p4 = por %p2668_p3, %p2667_p2 }
  0xc5   : > { %v2211_v58 = vsel %vm646_vm5, 1.0, %v2711_v39 }
  0xc6   : > { %p2665_p1 = pneg %p2664_p0 }
  0xc8   : > { %608 = vperm.xlu1 %2515, %v535_v24   ;;  %p2670_p5 = pnand %p2669_p4, %p2665_p1 }
  0xc9   : > { %611 = vperm.xlu2 %2516, %v536_v25   ;;  %862 = vperm.xlu0 %2514, %v2259_v26  }
  0xcb   : > { %v561_v63 = vpop.permute.xlu2 %560 }
  0xcc   : > { %vm647_vm10 = vcmp.eq.s32.totalorder %v3079_v33, %v561_v63  ;;  %v2459_v63 = vld [vmem:[%s3778_s3 + $0x28] sm:$0xff] }
  0xcd   : > { %v2212_v13 = vsel %vm647_vm10, 1.0, %v2711_v39 }
  0xd0   : > { %868 = vperm.xlu1 %2515, %v2261_v27  }
  0xd1   : > { %614 = vperm.xlu2 %2516, %v537_v28   ;;  %865 = vperm.xlu0 %2514, %v2260_v29  }
  0xd2   : > { %v806_v31 = vpop.permute.xlu1 %805 }
  0xd3   : > { %v549_v32 = vpop.permute.xlu0 %548  ;;  %vm900_vm0 = vcmp.eq.s32.totalorder %v3079_v33, %v806_v31  ;;  %v821_v9 = vpop.permute.xlu2 %820 }
  0xd4   : > { %vm643_vm1 = vcmp.eq.s32.totalorder %v3079_v33, %v549_v32  ;;  %v2272_v40 = vsel %vm900_vm0, 1.0, %v2711_v39  ;;  %vm905_vm11 = vcmp.eq.s32.totalorder %v3079_v33, %v821_v9 }
  0xd5   : > { %v2208_v41 = vsel %vm643_vm1, 1.0, %v2711_v39  ;;  %v2277_v14 = vsel %vm905_vm11, 1.0, %v2711_v39 }
  0xd6   : > { %v996_v47 = vadd.f32 %v2272_v40, %v2208_v41 }
  0xd8   : > { %871 = vperm.xlu1 %2515, %v2262_v34  }
  0xd9   : > { %874 = vperm.xlu2 %2516, %v2263_v35   ;;  %617 = vperm.xlu0 %2514, %v538_v36  }
  0xda   : > { %v809_v38 = vpop.permute.xlu1 %808 }
  0xdb   : > { %vm901_vm2 = vcmp.eq.s32.totalorder %v3079_v33, %v809_v38  ;;  %v552_v42 = vpop.permute.xlu0 %551  ;;  %v824_v24 = vpop.permute.xlu2 %823 }
  0xdc   : > { %v2273_v43 = vsel %vm901_vm2, 1.0, %v2711_v39  ;;  %vm644_vm3 = vcmp.eq.s32.totalorder %v3079_v33, %v552_v42  ;;  %vm906_vm15 = vcmp.eq.s32.totalorder %v3079_v33, %v824_v24  ;;  %v2462_v24 = vld [vmem:[%s3778_s3 + $0x40] sm:$0xff] }
  0xdd   : > { %v2209_v44 = vsel %vm644_vm3, 1.0, %v2711_v39  ;;  %v2278_v30 = vsel %vm906_vm15, 1.0, %v2711_v39 }
  0xde   : > { %v997_v48 = vadd.f32 %v2273_v43, %v2209_v44 }
  0xe0   : > { %623 = vperm.xlu1 %2515, %v540_v45   ;;  %v1028_v50 = vpack.c.bf16 %v997_v48, %v996_v47 }
  0xe1   : > { %877 = vperm.xlu2 %2516, %v2264_v46   ;;  %620 = vperm.xlu0 %2514, %v539_v49  }
  0xe2   : > { %1154 = vmatmul.bf16.vlgmr.msra.gmra.mxu0 %v1028_v50  ;;  %1243 = vmatmul.bf16.vlgmr.msra.gmra.mxu1 %v1028_v50  ;;  %v815_v52 = vpop.permute.xlu1 %814 }
  0xe3   : > { %v812_v53 = vpop.permute.xlu0 %811  ;;  %vm903_vm6 = vcmp.eq.s32.totalorder %v3079_v33, %v815_v52  ;;  %v576_v34 = vpop.permute.xlu2 %575 }
  0xe4   : > { %vm902_vm7 = vcmp.eq.s32.totalorder %v3079_v33, %v812_v53  ;;  %v2275_v59 = vsel %vm903_vm6, 1.0, %v2711_v39  ;;  %vm652_vm2 = vcmp.eq.s32.totalorder %v3079_v33, %v576_v34 }
  0xe5   : > { %v2274_v60 = vsel %vm902_vm7, 1.0, %v2711_v39  ;;  %v999_v61 = vadd.f32 %v2275_v59, %v2211_v58  ;;  %v2217_v40 = vsel %vm652_vm2, 1.0, %v2711_v39 }
  0xe6   : > { %v998_v62 = vadd.f32 %v2274_v60, %v2210_v57  ;;  %v2469_v57 = vld [vmem:[%s3778_s3 + $0x78] sm:$0xff]  ;;  %v2460_v60 = vld [vmem:[%s3778_s3 + $0x30] sm:$0xff] }
  0xe7   : > { %1641 = vmatpush.bf16.msra.mxu3 %v2469_v57 }
  0xe8   : > { %626 = vperm.xlu1 %2515, %v541_v54   ;;  %v1029_v4 = vpack.c.bf16 %v999_v61, %v998_v62  ;;  %v2468_v61 = vld [vmem:[%s3778_s3 + $0x70] sm:$0xff] }
  0xe9   : > { %629 = vperm.xlu2 %2516, %v542_v55   ;;  %880 = vperm.xlu0 %2514, %v2265_v56   ;;  %v2461_v56 = vld [vmem:[%s3778_s3 + $0x38] sm:$0xff] }
  0xea   : > { %v818_v5 = vpop.permute.xlu1 %817  ;;  %1552 = vmatpush.bf16.msra.mxu2 %v2461_v56 }
  0xeb   : > { %v564_v3 = vpop.permute.xlu0 %563  ;;  %vm904_vm8 = vcmp.eq.s32.totalorder %v3079_v33, %v818_v5  ;;  %v579_v41 = vpop.permute.xlu2 %578  ;;  %1642 = vmatpush.bf16.msra.mxu3 %v2468_v61 }
  0xec   : > { %vm648_vm9 = vcmp.eq.s32.totalorder %v3079_v33, %v564_v3  ;;  %v2276_v10 = vsel %vm904_vm8, 1.0, %v2711_v39  ;;  %vm653_vm6 = vcmp.eq.s32.totalorder %v3079_v33, %v579_v41  ;;  %v2466_v3 = vld [vmem:[%s3778_s3 + $0x60] sm:$0xff] }
  0xed   : > { %v2213_v11 = vsel %vm648_vm9, 1.0, %v2711_v39  ;;  %v1000_v15 = vadd.f32 %v2276_v10, %v2212_v13  ;;  %v2218_v52 = vsel %vm653_vm6, 1.0, %v2711_v39  ;;  %v2457_v10 = vld [vmem:[%s3778_s3 + $0x18] sm:$0xff] }
  0xee   : > { %v1001_v16 = vadd.f32 %v2277_v14, %v2213_v11  ;;  %1553 = vmatpush.bf16.msra.mxu2 %v2460_v60  ;;  %v2465_v11 = vld [vmem:[%s3778_s3 + $0x58] sm:$0xff] }
  0xf0   : > { %886 = vperm.xlu1 %2515, %v2267_v0   ;;  %v1030_v21 = vpack.c.bf16 %v1001_v16, %v1000_v15  ;;  %v2467_v0 = vld [vmem:[%s3778_s3 + $0x68] sm:$0xff]  ;;  %v2456_v15 = vld [vmem:[%s3778_s3 + $0x10] sm:$0xff] }
  0xf1   : > { %632 = vperm.xlu2 %2516, %v543_v1   ;;  %883 = vperm.xlu0 %2514, %v2266_v2   ;;  %v2458_v2 = vld [vmem:[%s3778_s3 + $0x20] sm:$0xff]  ;;  %v2464_v16 = vld [vmem:[%s3778_s3 + $0x50] sm:$0xff] }
  0xf2   : > { %1159 = vmatmul.bf16.gmra.mxu0 %v1029_v4  ;;  %1248 = vmatmul.bf16.gmra.mxu1 %v1029_v4  ;;  %v570_v20 = vpop.permute.xlu1 %569 }
  0xf3   : > { %v567_v12 = vpop.permute.xlu0 %566  ;;  %vm650_vm13 = vcmp.eq.s32.totalorder %v3079_v33, %v570_v20  ;;  %v839_v48 = vpop.permute.xlu2 %838  ;;  %1554 = vmatpush.bf16.msra.mxu2 %v2459_v63  ;;  %1643 = vmatpush.bf16.msra.mxu3 %v2467_v0  ;;  %v2463_v20 = vld [vmem:[%s3778_s3 + $0x48] sm:$0xff] }
  0xf4   : > { %vm649_vm14 = vcmp.eq.s32.totalorder %v3079_v33, %v567_v12  ;;  %v2215_v27 = vsel %vm650_vm13, 1.0, %v2711_v39  ;;  %vm911_vm7 = vcmp.eq.s32.totalorder %v3079_v33, %v839_v48 }
  0xf5   : > { %v2214_v28 = vsel %vm649_vm14, 1.0, %v2711_v39  ;;  %v2283_v53 = vsel %vm911_vm7, 1.0, %v2711_v39 }
  0xf6   : > { %v1002_v31 = vadd.f32 %v2278_v30, %v2214_v28 }
  0xf7   : > { %1555 = vmatpush.bf16.msra.mxu2 %v2458_v2  ;;  %1644 = vmatpush.bf16.msra.mxu3 %v2466_v3 }
  0xf8   : > { %889 = vperm.xlu1 %2515, %v2268_v6  }
  0xf9   : > { %892 = vperm.xlu2 %2516, %v2269_v7   ;;  %635 = vperm.xlu0 %2514, %v544_v8  }
  0xfa   : > { %v573_v25 = vpop.permute.xlu1 %572 }
  0xfb   : > { %v827_v22 = vpop.permute.xlu0 %826  ;;  %vm651_vm3 = vcmp.eq.s32.totalorder %v3079_v33, %v573_v25  ;;  %v842_v1 = vpop.permute.xlu2 %841  ;;  %1556 = vmatpush.bf16.msra.mxu2 %v2457_v10  ;;  %1645 = vmatpush.bf16.msra.mxu3 %v2465_v11 }
  0xfc   : > { %vm907_vm12 = vcmp.eq.s32.totalorder %v3079_v33, %v827_v22  ;;  %v2216_v42 = vsel %vm651_vm3, 1.0, %v2711_v39  ;;  %vm912_vm11 = vcmp.eq.s32.totalorder %v3079_v33, %v842_v1 }
  0xfd   : > { %v2279_v26 = vsel %vm907_vm12, 1.0, %v2711_v39  ;;  %v2284_v9 = vsel %vm912_vm11, 1.0, %v2711_v39 }
  0xfe   : > { %v1003_v29 = vadd.f32 %v2279_v26, %v2215_v27 }
  0xff   : > { %1557 = vmatpush.bf16.msra.mxu2 %v2456_v15  ;;  %1646 = vmatpush.bf16.msra.mxu3 %v2464_v16 }
 0x100   : > { %641 = vperm.xlu1 %2515, %v546_v17   ;;  %v1031_v32 = vpack.c.bf16 %v1003_v29, %v1002_v31 }
 0x101   : > { %895 = vperm.xlu2 %2516, %v2270_v18   ;;  %638 = vperm.xlu0 %2514, %v545_v19   ;;  %v2455_v19 = vld [vmem:[%s3778_s3 + $0x8] sm:$0xff] }
 0x102   : > { %1164 = vmatmul.bf16.gmra.mxu0 %v1030_v21  ;;  %1253 = vmatmul.bf16.gmra.mxu1 %v1030_v21  ;;  %v833_v35 = vpop.permute.xlu1 %832 }
 0x103   : > { %v830_v36 = vpop.permute.xlu0 %829  ;;  %vm909_vm0 = vcmp.eq.s32.totalorder %v3079_v33, %v833_v35  ;;  %v594_v14 = vpop.permute.xlu2 %593  ;;  %1558 = vmatpush.bf16.msra.mxu2 %v2455_v19  ;;  %1647 = vmatpush.bf16.msra.mxu3 %v2463_v20 }
 0x104   : > { %vm908_vm1 = vcmp.eq.s32.totalorder %v3079_v33, %v830_v36  ;;  %v2281_v37 = vsel %vm909_vm0, 1.0, %v2711_v39  ;;  %vm658_vm14 = vcmp.eq.s32.totalorder %v3079_v33, %v594_v14 }
 0x105   : > { %v2280_v38 = vsel %vm908_vm1, 1.0, %v2711_v39  ;;  %v1005_v43 = vadd.f32 %v2281_v37, %v2217_v40  ;;  %v2223_v25 = vsel %vm658_vm14, 1.0, %v2711_v39 }
 0x106   : > { %v1004_v44 = vadd.f32 %v2280_v38, %v2216_v42 }
 0x107   : > { %1648 = vmatpush.bf16.msra.mxu3 %v2462_v24 }
 0x108   : > { %v1032_v46 = vpack.c.bf16 %v1005_v43, %v1004_v44  ;;  %v1060_v44 = vld [vmem:[%s3777_s2] sm:$0x3] }
 0x109   : > { %898 = vperm.xlu0 %2514, %v2271_v23   ;;  %v2454_v23 = vld [vmem:[%s3778_s3] sm:$0xff]  ;;  %v3223_v48 = vperm.slane %v1060_v44, 0 }
 0x10a   : > { %v836_v47 = vpop.permute.xlu1 %835  ;;  %1559 = vmatpush.bf16.msra.mxu2 %v2454_v23 }
 0x10b   : > { %v582_v45 = vpop.permute.xlu0 %581  ;;  %vm910_vm4 = vcmp.eq.s32.totalorder %v3079_v33, %v836_v47  ;;  %v597_v26 = vpop.permute.xlu2 %596 }
 0x10c   : > { %vm654_vm5 = vcmp.eq.s32.totalorder %v3079_v33, %v582_v45  ;;  %v2282_v49 = vsel %vm910_vm4, 1.0, %v2711_v39  ;;  %vm659_vm2 = vcmp.eq.s32.totalorder %v3079_v33, %v597_v26 }
 0x10d   : > { %v2219_v50 = vsel %vm654_vm5, 1.0, %v2711_v39  ;;  %v1006_v54 = vadd.f32 %v2282_v49, %v2218_v52  ;;  %v2224_v38 = vsel %vm659_vm2, 1.0, %v2711_v39  ;;  %v3225_v49 = vperm.slane %v1060_v44, 1 }
 0x10e   : > { %v1007_v55 = vadd.f32 %v2283_v53, %v2219_v50 }
 0x110   : > { %v1033_v59 = vpack.c.bf16 %v1007_v55, %v1006_v54 }
 0x112   : > { %1169 = vmatmul.bf16.gmra.mxu0 %v1031_v32  ;;  %1258 = vmatmul.bf16.gmra.mxu1 %v1031_v32  ;;  %v588_v58 = vpop.permute.xlu1 %587 }
 0x113   : > { %v585_v51 = vpop.permute.xlu0 %584  ;;  %vm656_vm9 = vcmp.eq.s32.totalorder %v3079_v33, %v588_v58  ;;  %v857_v34 = vpop.permute.xlu2 %856 }
 0x114   : > { %vm655_vm10 = vcmp.eq.s32.totalorder %v3079_v33, %v585_v51  ;;  %v2221_v6 = vsel %vm656_vm9, 1.0, %v2711_v39  ;;  %vm917_vm3 = vcmp.eq.s32.totalorder %v3079_v33, %v857_v34 }
 0x115   : > { %v2220_v7 = vsel %vm655_vm10, 1.0, %v2711_v39  ;;  %v2289_v40 = vsel %vm917_vm3, 1.0, %v2711_v39 }
 0x116   : > { %v1008_v12 = vadd.f32 %v2284_v9, %v2220_v7 }
 0x11a   : > { %v591_v4 = vpop.permute.xlu1 %590 }
 0x11b   : > { %v845_v62 = vpop.permute.xlu0 %844  ;;  %vm657_vm15 = vcmp.eq.s32.totalorder %v3079_v33, %v591_v4  ;;  %v860_v51 = vpop.permute.xlu2 %859 }
 0x11c   : > { %vm913_vm8 = vcmp.eq.s32.totalorder %v3079_v33, %v845_v62  ;;  %v2222_v27 = vsel %vm657_vm15, 1.0, %v2711_v39  ;;  %vm918_vm7 = vcmp.eq.s32.totalorder %v3079_v33, %v860_v51 }
 0x11d   : > { %v2285_v5 = vsel %vm913_vm8, 1.0, %v2711_v39 }
 0x11e   : > { %v1009_v8 = vadd.f32 %v2285_v5, %v2221_v6  ;;  %v2290_v5 = vsel %vm918_vm7, 1.0, %v2711_v39 }
 0x120   : > { %v1034_v13 = vpack.c.bf16 %v1009_v8, %v1008_v12 }
 0x122   : > { %1174 = vmatmul.bf16.gmra.mxu0 %v1032_v46  ;;  %1263 = vmatmul.bf16.gmra.mxu1 %v1032_v46  ;;  %v851_v17 = vpop.permute.xlu1 %850 }
 0x123   : > { %v848_v18 = vpop.permute.xlu0 %847  ;;  %vm915_vm12 = vcmp.eq.s32.totalorder %v3079_v33, %v851_v17  ;;  %v612_v10 = vpop.permute.xlu2 %611 }
 0x124   : > { %vm914_vm13 = vcmp.eq.s32.totalorder %v3079_v33, %v848_v18  ;;  %v2287_v21 = vsel %vm915_vm12, 1.0, %v2711_v39  ;;  %vm664_vm10 = vcmp.eq.s32.totalorder %v3079_v33, %v612_v10 }
 0x125   : > { %v2286_v22 = vsel %vm914_vm13, 1.0, %v2711_v39  ;;  %v1011_v28 = vadd.f32 %v2287_v21, %v2223_v25  ;;  %v2229_v25 = vsel %vm664_vm10, 1.0, %v2711_v39 }
 0x126   : > { %v1010_v29 = vadd.f32 %v2286_v22, %v2222_v27 }
 0x128   : > { %v1035_v31 = vpack.c.bf16 %v1011_v28, %v1010_v29 }
 0x12a   : > { %v854_v32 = vpop.permute.xlu1 %853 }
 0x12b   : > { %v600_v30 = vpop.permute.xlu0 %599  ;;  %vm916_vm0 = vcmp.eq.s32.totalorder %v3079_v33, %v854_v32  ;;  %v615_v26 = vpop.permute.xlu2 %614 }
 0x12c   : > { %vm660_vm1 = vcmp.eq.s32.totalorder %v3079_v33, %v600_v30  ;;  %v2288_v35 = vsel %vm916_vm0, 1.0, %v2711_v39  ;;  %vm665_vm14 = vcmp.eq.s32.totalorder %v3079_v33, %v615_v26 }
 0x12d   : > { %v2225_v36 = vsel %vm660_vm1, 1.0, %v2711_v39  ;;  %v1012_v41 = vadd.f32 %v2288_v35, %v2224_v38 }
 0x12e   : > { %v1013_v42 = vadd.f32 %v2289_v40, %v2225_v36 }
 0x130   : > { %v1036_v47 = vpack.c.bf16 %v1013_v42, %v1012_v41 }
 0x132   : > { %1179 = vmatmul.bf16.gmra.mxu0 %v1033_v59  ;;  %1268 = vmatmul.bf16.gmra.mxu1 %v1033_v59  ;;  %v606_v43 = vpop.permute.xlu1 %605 }
 0x133   : > { %v603_v37 = vpop.permute.xlu0 %602  ;;  %vm662_vm5 = vcmp.eq.s32.totalorder %v3079_v33, %v606_v43  ;;  %v875_v38 = vpop.permute.xlu2 %874 }
 0x134   : > { %vm661_vm6 = vcmp.eq.s32.totalorder %v3079_v33, %v603_v37  ;;  %v2227_v0 = vsel %vm662_vm5, 1.0, %v2711_v39  ;;  %vm923_vm15 = vcmp.eq.s32.totalorder %v3079_v33, %v875_v38 }
 0x135   : > { %v2226_v1 = vsel %vm661_vm6, 1.0, %v2711_v39 }
 0x136   : > { %v1014_v6 = vadd.f32 %v2290_v5, %v2226_v1 }
 0x13a   : > { %v609_v58 = vpop.permute.xlu1 %608 }
 0x13b   : > { %v863_v50 = vpop.permute.xlu0 %862  ;;  %vm663_vm11 = vcmp.eq.s32.totalorder %v3079_v33, %v609_v58 }
 0x13c   : > { %vm919_vm4 = vcmp.eq.s32.totalorder %v3079_v33, %v863_v50  ;;  %v2228_v27 = vsel %vm663_vm11, 1.0, %v2711_v39 }
 0x13d   : > { %v2291_v59 = vsel %vm919_vm4, 1.0, %v2711_v39 }
 0x13e   : > { %v1015_v2 = vadd.f32 %v2291_v59, %v2227_v0 }
 0x140   : > { %v1037_v9 = vpack.c.bf16 %v1015_v2, %v1014_v6  ;;  %v878_v2 = vpop.permute.xlu2 %877 }
 0x141   : > { %vm924_vm3 = vcmp.eq.s32.totalorder %v3079_v33, %v878_v2 }
 0x142   : > { %1184 = vmatmul.bf16.gmra.mxu0 %v1034_v13  ;;  %1273 = vmatmul.bf16.gmra.mxu1 %v1034_v13  ;;  %v869_v11 = vpop.permute.xlu1 %868 }
 0x143   : > { %v866_v12 = vpop.permute.xlu0 %865  ;;  %vm921_vm8 = vcmp.eq.s32.totalorder %v3079_v33, %v869_v11 }
 0x144   : > { %vm920_vm9 = vcmp.eq.s32.totalorder %v3079_v33, %v866_v12  ;;  %v2293_v19 = vsel %vm921_vm8, 1.0, %v2711_v39 }
 0x145   : > { %v2292_v20 = vsel %vm920_vm9, 1.0, %v2711_v39  ;;  %v1017_v28 = vadd.f32 %v2293_v19, %v2229_v25 }
 0x146   : > { %v1016_v29 = vadd.f32 %v2292_v20, %v2228_v27  ;;  %v2296_v20 = vsel %vm924_vm3, 1.0, %v2711_v39 }
 0x148   : > { %v1038_v36 = vpack.c.bf16 %v1017_v28, %v1016_v29  ;;  %v630_v25 = vpop.permute.xlu2 %629 }
 0x149   : > { %vm670_vm6 = vcmp.eq.s32.totalorder %v3079_v33, %v630_v25 }
 0x14a   : > { %v872_v37 = vpop.permute.xlu1 %871 }
 0x14b   : > { %v618_v32 = vpop.permute.xlu0 %617  ;;  %vm922_vm12 = vcmp.eq.s32.totalorder %v3079_v33, %v872_v37 }
 0x14c   : > { %vm666_vm13 = vcmp.eq.s32.totalorder %v3079_v33, %v618_v32 }
 0x152   : > { %1189 = vmatmul.bf16.gmra.mxu0 %v1035_v31  ;;  %1278 = vmatmul.bf16.gmra.mxu1 %v1035_v31 }
 0x153   : > { %v621_v50 = vpop.permute.xlu0 %620 }
 0x154   : > { %vm667_vm2 = vcmp.eq.s32.totalorder %v3079_v33, %v621_v50 }
 0x15b   : > { %v881_v1 = vpop.permute.xlu0 %880 }
 0x15c   : > { %vm925_vm0 = vcmp.eq.s32.totalorder %v3079_v33, %v881_v1 }
 0x15d   : > { %v2297_v10 = vsel %vm925_vm0, 1.0, %v2711_v39  ;;  %vm1730_vm0 = vcmp.lt.s32.totalorder %v3079_v33, 64 }
 0x15f   : > { %v1155_v45 = vpop.f32.mrf.mxu0  ;;  %v1244_v46 = vpop.f32.mrf.mxu1 }
 0x160   : > { %v1156_v52 = vadd.f32 %v1155_v45, %v3223_v48  ;;  %v1245_v53 = vadd.f32 %v1244_v46, %v3225_v49  ;;  %v2294_v46 = vsel %vm922_vm12, 1.0, %v2711_v39 }
 0x162   : > { %1194 = vmatmul.bf16.gmra.mxu0 %v1036_v47  ;;  %1283 = vmatmul.bf16.gmra.mxu1 %v1036_v47  ;;  %v1324_v60 = vmax.f32 %v1156_v52, 0.0  ;;  %v1325_v61 = vmax.f32 %v1245_v53, 0.0  ;;  %v2231_v47 = vsel %vm666_vm13, 1.0, %v2711_v39 }
 0x163   : > { %v884_v27 = vpop.permute.xlu0 %883 }
 0x164   : > { %vm926_vm5 = vcmp.eq.s32.totalorder %v3079_v33, %v884_v27 }
 0x167   : > { %v1157_v54 = vpop.f32.mrf.mxu0  ;;  %v1246_v55 = vpop.f32.mrf.mxu1 }
 0x168   : > { %v1158_v56 = vadd.f32 %v1157_v54, %v3223_v48  ;;  %v1247_v57 = vadd.f32 %v1246_v55, %v3225_v49  ;;  %v2230_v55 = vsel %vm665_vm14, 1.0, %v2711_v39 }
 0x16a   : > { %v1326_v62 = vmax.f32 %v1158_v56, 0.0  ;;  %v1327_v63 = vmax.f32 %v1247_v57, 0.0  ;;  %v2295_v56 = vsel %vm923_vm15, 1.0, %v2711_v39  ;;  %v1018_v57 = vadd.f32 %v2294_v46, %v2230_v55 }
 0x16b   : > { %v1019_v58 = vadd.f32 %v2295_v56, %v2231_v47 }
 0x16c   : > { %v1388_v3 = vpack.c.bf16 %v1326_v62, %v1324_v60  ;;  %v1389_v4 = vpack.c.bf16 %v1327_v63, %v1325_v61  ;;  %v624_v61 = vpop.permute.xlu1 %623 }
 0x16d   : > { %v1039_v0 = vpack.c.bf16 %v1019_v58, %v1018_v57  ;;  %vm668_vm1 = vcmp.eq.s32.totalorder %v3079_v33, %v624_v61 }
 0x16e   : > { %1560 = vmatmul.bf16.vlgmr.msra.gmra.mxu2 %v1388_v3  ;;  %1649 = vmatmul.bf16.vlgmr.msra.gmra.mxu3 %v1389_v4 }
 0x16f   : > { %v1160_v7 = vpop.f32.mrf.mxu0  ;;  %v1249_v8 = vpop.f32.mrf.mxu1 }
 0x170   : > { %v1161_v13 = vadd.f32 %v1160_v7, %v3223_v48  ;;  %v1250_v14 = vadd.f32 %v1249_v8, %v3225_v49 }
 0x172   : > { %1199 = vmatmul.bf16.gmra.mxu0 %v1037_v9  ;;  %1288 = vmatmul.bf16.gmra.mxu1 %v1037_v9  ;;  %v1328_v21 = vmax.f32 %v1161_v13, 0.0  ;;  %v1329_v22 = vmax.f32 %v1250_v14, 0.0 }
 0x174   : > { %v627_v9 = vpop.permute.xlu1 %626 }
 0x175   : > { %vm669_vm7 = vcmp.eq.s32.totalorder %v3079_v33, %v627_v9 }
 0x177   : > { %v1162_v15 = vpop.f32.mrf.mxu0  ;;  %v1251_v16 = vpop.f32.mrf.mxu1 }
 0x178   : > { %v1163_v17 = vadd.f32 %v1162_v15, %v3223_v48  ;;  %v1252_v18 = vadd.f32 %v1251_v16, %v3225_v49  ;;  %v2233_v15 = vsel %vm668_vm1, 1.0, %v2711_v39  ;;  %v2232_v16 = vsel %vm667_vm2, 1.0, %v2711_v39 }
 0x17a   : > { %v1330_v23 = vmax.f32 %v1163_v17, 0.0  ;;  %v1331_v24 = vmax.f32 %v1252_v18, 0.0  ;;  %v1021_v17 = vadd.f32 %v2297_v10, %v2233_v15 }
 0x17c   : > { %v1390_v30 = vpack.c.bf16 %v1330_v23, %v1328_v21  ;;  %v1391_v31 = vpack.c.bf16 %v1331_v24, %v1329_v22  ;;  %v1020_v21 = vadd.f32 %v2296_v20, %v2232_v16  ;;  %v887_v26 = vpop.permute.xlu1 %886 }
 0x17d   : > { %vm927_vm4 = vcmp.eq.s32.totalorder %v3079_v33, %v887_v26 }
 0x17e   : > { %1565 = vmatmul.bf16.gmra.mxu2 %v1390_v30  ;;  %1654 = vmatmul.bf16.gmra.mxu3 %v1391_v31  ;;  %v1040_v24 = vpack.c.bf16 %v1021_v17, %v1020_v21 }
 0x17f   : > { %v1165_v34 = vpop.f32.mrf.mxu0  ;;  %v1254_v35 = vpop.f32.mrf.mxu1 }
 0x180   : > { %v1166_v40 = vadd.f32 %v1165_v34, %v3223_v48  ;;  %v1255_v41 = vadd.f32 %v1254_v35, %v3225_v49  ;;  %v2299_v35 = vsel %vm927_vm4, 1.0, %v2711_v39 }
 0x182   : > { %1204 = vmatmul.bf16.gmra.mxu0 %v1038_v36  ;;  %1293 = vmatmul.bf16.gmra.mxu1 %v1038_v36  ;;  %v1332_v51 = vmax.f32 %v1166_v40, 0.0  ;;  %v1333_v52 = vmax.f32 %v1255_v41, 0.0  ;;  %v2298_v36 = vsel %vm926_vm5, 1.0, %v2711_v39 }
 0x184   : > { %v890_v55 = vpop.permute.xlu1 %889 }
 0x185   : > { %vm928_vm8 = vcmp.eq.s32.totalorder %v3079_v33, %v890_v55 }
 0x187   : > { %v1167_v42 = vpop.f32.mrf.mxu0  ;;  %v1256_v43 = vpop.f32.mrf.mxu1 }
 0x188   : > { %v1168_v44 = vadd.f32 %v1167_v42, %v3223_v48  ;;  %v1257_v45 = vadd.f32 %v1256_v43, %v3225_v49  ;;  %v2235_v42 = vsel %vm670_vm6, 1.0, %v2711_v39  ;;  %v633_v43 = vpop.permute.xlu2 %632 }
 0x189   : > { %vm671_vm10 = vcmp.eq.s32.totalorder %v3079_v33, %v633_v43 }
 0x18a   : > { %v1334_v53 = vmax.f32 %v1168_v44, 0.0  ;;  %v1335_v54 = vmax.f32 %v1257_v45, 0.0  ;;  %v2234_v44 = vsel %vm669_vm7, 1.0, %v2711_v39  ;;  %v1023_v45 = vadd.f32 %v2299_v35, %v2235_v42 }
 0x18b   : > { %v1022_v46 = vadd.f32 %v2298_v36, %v2234_v44 }
 0x18c   : > { %v1392_v59 = vpack.c.bf16 %v1334_v53, %v1332_v51  ;;  %v1393_v60 = vpack.c.bf16 %v1335_v54, %v1333_v52  ;;  %v636_v51 = vpop.permute.xlu0 %635  ;;  %v642_v16 = vpop.permute.xlu1 %641 }
 0x18d   : > { %v1041_v54 = vpack.c.bf16 %v1023_v45, %v1022_v46  ;;  %vm672_vm9 = vcmp.eq.s32.totalorder %v3079_v33, %v636_v51  ;;  %vm674_vm13 = vcmp.eq.s32.totalorder %v3079_v33, %v642_v16 }
 0x18e   : > { %1570 = vmatmul.bf16.gmra.mxu2 %v1392_v59  ;;  %1659 = vmatmul.bf16.gmra.mxu3 %v1393_v60 }
 0x18f   : > { %v1170_v62 = vpop.f32.mrf.mxu0  ;;  %v1259_v63 = vpop.f32.mrf.mxu1 }
 0x190   : > { %v1171_v3 = vadd.f32 %v1170_v62, %v3223_v48  ;;  %v1260_v4 = vadd.f32 %v1259_v63, %v3225_v49  ;;  %v893_v56 = vpop.permute.xlu2 %892  ;;  %v2300_v63 = vsel %vm928_vm8, 1.0, %v2711_v39 }
 0x191   : > { %vm929_vm11 = vcmp.eq.s32.totalorder %v3079_v33, %v893_v56 }
 0x192   : > { %1209 = vmatmul.bf16.gmra.mxu0 %v1039_v0  ;;  %1298 = vmatmul.bf16.gmra.mxu1 %v1039_v0  ;;  %v1336_v11 = vmax.f32 %v1171_v3, 0.0  ;;  %v1337_v12 = vmax.f32 %v1260_v4, 0.0  ;;  %v2237_v0 = vsel %vm672_vm9, 1.0, %v2711_v39 }
 0x194   : > { %v639_v1 = vpop.permute.xlu0 %638 }
 0x195   : > { %vm673_vm14 = vcmp.eq.s32.totalorder %v3079_v33, %v639_v1 }
 0x197   : > { %v1172_v5 = vpop.f32.mrf.mxu0  ;;  %v1261_v6 = vpop.f32.mrf.mxu1 }
 0x198   : > { %v1173_v7 = vadd.f32 %v1172_v5, %v3223_v48  ;;  %v1262_v8 = vadd.f32 %v1261_v6, %v3225_v49  ;;  %v2236_v6 = vsel %vm671_vm10, 1.0, %v2711_v39  ;;  %v896_v17 = vpop.permute.xlu2 %895 }
 0x199   : > { %vm930_vm15 = vcmp.eq.s32.totalorder %v3079_v33, %v896_v17 }
 0x19a   : > { %v1338_v13 = vmax.f32 %v1173_v7, 0.0  ;;  %v1339_v14 = vmax.f32 %v1262_v8, 0.0  ;;  %v2301_v7 = vsel %vm929_vm11, 1.0, %v2711_v39  ;;  %v1024_v8 = vadd.f32 %v2300_v63, %v2236_v6 }
 0x19b   : > { %v1025_v9 = vadd.f32 %v2301_v7, %v2237_v0  ;;  %v2302_v35 = vsel %vm930_vm15, 1.0, %v2711_v39 }
 0x19c   : > { %v1394_v18 = vpack.c.bf16 %v1338_v13, %v1336_v11  ;;  %v1395_v19 = vpack.c.bf16 %v1339_v14, %v1337_v12  ;;  %v899_v15 = vpop.permute.xlu0 %898 }
 0x19d   : > { %v1042_v14 = vpack.c.bf16 %v1025_v9, %v1024_v8  ;;  %vm931_vm12 = vcmp.eq.s32.totalorder %v3079_v33, %v899_v15 }
 0x19e   : > { %1575 = vmatmul.bf16.gmra.mxu2 %v1394_v18  ;;  %1664 = vmatmul.bf16.gmra.mxu3 %v1395_v19 }
 0x19f   : > { %v1175_v22 = vpop.f32.mrf.mxu0  ;;  %v1264_v23 = vpop.f32.mrf.mxu1 }
 0x1a0   : > { %v1176_v28 = vadd.f32 %v1175_v22, %v3223_v48  ;;  %v1265_v29 = vadd.f32 %v1264_v23, %v3225_v49 }
 0x1a2   : > { %1214 = vmatmul.bf16.gmra.mxu0 %v1040_v24  ;;  %1303 = vmatmul.bf16.gmra.mxu1 %v1040_v24  ;;  %v1340_v37 = vmax.f32 %v1176_v28, 0.0  ;;  %v1341_v38 = vmax.f32 %v1265_v29, 0.0  ;;  %v2303_v24 = vsel %vm931_vm12, 1.0, %v2711_v39  ;;  %v2239_v29 = vsel %vm674_vm13, 1.0, %v2711_v39 }
 0x1a7   : > { %v1177_v30 = vpop.f32.mrf.mxu0  ;;  %v1266_v31 = vpop.f32.mrf.mxu1 }
 0x1a8   : > { %v1178_v32 = vadd.f32 %v1177_v30, %v3223_v48  ;;  %v1267_v34 = vadd.f32 %v1266_v31, %v3225_v49  ;;  %v2238_v30 = vsel %vm673_vm14, 1.0, %v2711_v39  ;;  %v1027_v31 = vadd.f32 %v2303_v24, %v2239_v29 }
 0x1a9   : > { %v1026_v36 = vadd.f32 %v2302_v35, %v2238_v30 }
 0x1aa   : > { %v1342_v40 = vmax.f32 %v1178_v32, 0.0  ;;  %v1343_v41 = vmax.f32 %v1267_v34, 0.0 }
 0x1ac   : > { %v1396_v47 = vpack.c.bf16 %v1342_v40, %v1340_v37  ;;  %v1397_v50 = vpack.c.bf16 %v1343_v41, %v1341_v38  ;;  %v1043_v40 = vpack.c.bf16 %v1027_v31, %v1026_v36 }
 0x1ae   : > { %1580 = vmatmul.bf16.gmra.mxu2 %v1396_v47  ;;  %1669 = vmatmul.bf16.gmra.mxu3 %v1397_v50 }
 0x1af   : > { %v1180_v52 = vpop.f32.mrf.mxu0  ;;  %v1269_v53 = vpop.f32.mrf.mxu1 }
 0x1b0   : > { %v1181_v57 = vadd.f32 %v1180_v52, %v3223_v48  ;;  %v1270_v58 = vadd.f32 %v1269_v53, %v3225_v49 }
 0x1b2   : > { %1219 = vmatmul.bf16.gmra.mxu0 %v1041_v54  ;;  %1308 = vmatmul.bf16.gmra.mxu1 %v1041_v54  ;;  %v1344_v2 = vmax.f32 %v1181_v57, 0.0  ;;  %v1345_v3 = vmax.f32 %v1270_v58, 0.0 }
 0x1b7   : > { %v1182_v59 = vpop.f32.mrf.mxu0  ;;  %v1271_v60 = vpop.f32.mrf.mxu1 }
 0x1b8   : > { %v1183_v61 = vadd.f32 %v1182_v59, %v3223_v48  ;;  %v1272_v62 = vadd.f32 %v1271_v60, %v3225_v49 }
 0x1ba   : > { %v1346_v4 = vmax.f32 %v1183_v61, 0.0  ;;  %v1347_v5 = vmax.f32 %v1272_v62, 0.0 }
 0x1bc   : > { %v1398_v10 = vpack.c.bf16 %v1346_v4, %v1344_v2  ;;  %v1399_v11 = vpack.c.bf16 %v1347_v5, %v1345_v3  ;;  %v3322_v4 = vld [vmem:[%s3779_s4] ss:$0 sm:$0xff] }
 0x1be   : > { %1585 = vmatmul.bf16.gmra.mxu2 %v1398_v10  ;;  %1674 = vmatmul.bf16.gmra.mxu3 %v1399_v11 }
 0x1bf   : > { %v1185_v12 = vpop.f32.mrf.mxu0  ;;  %v1274_v13 = vpop.f32.mrf.mxu1 }
 0x1c0   : > { %v1186_v18 = vadd.f32 %v1185_v12, %v3223_v48  ;;  %v1275_v19 = vadd.f32 %v1274_v13, %v3225_v49 }
 0x1c2   : > { %1224 = vmatmul.bf16.gmra.mxu0 %v1042_v14  ;;  %1313 = vmatmul.bf16.gmra.mxu1 %v1042_v14  ;;  %v1348_v25 = vmax.f32 %v1186_v18, 0.0  ;;  %v1349_v26 = vmax.f32 %v1275_v19, 0.0 }
 0x1c7   : > { %v1187_v20 = vpop.f32.mrf.mxu0  ;;  %v1276_v21 = vpop.f32.mrf.mxu1 }
 0x1c8   : > { %v1188_v22 = vadd.f32 %v1187_v20, %v3223_v48  ;;  %v1277_v23 = vadd.f32 %v1276_v21, %v3225_v49 }
 0x1ca   : > { %v1350_v27 = vmax.f32 %v1188_v22, 0.0  ;;  %v1351_v28 = vmax.f32 %v1277_v23, 0.0 }
 0x1cc   : > { %v1400_v32 = vpack.c.bf16 %v1350_v27, %v1348_v25  ;;  %v1401_v34 = vpack.c.bf16 %v1351_v28, %v1349_v26 }
 0x1ce   : > { %1590 = vmatmul.bf16.gmra.mxu2 %v1400_v32  ;;  %1679 = vmatmul.bf16.gmra.mxu3 %v1401_v34 }
 0x1cf   : > { %v1190_v37 = vpop.f32.mrf.mxu0  ;;  %v1279_v38 = vpop.f32.mrf.mxu1 }
 0x1d0   : > { %v1191_v41 = vadd.f32 %v1190_v37, %v3223_v48  ;;  %v1280_v42 = vadd.f32 %v1279_v38, %v3225_v49 }
 0x1d2   : > { %1229 = vmatmul.bf16.gmra.mxu0 %v1043_v40  ;;  %1318 = vmatmul.bf16.gmra.mxu1 %v1043_v40  ;;  %v1352_v47 = vmax.f32 %v1191_v41, 0.0  ;;  %v1353_v39 = vmax.f32 %v1280_v42, 0.0 }
 0x1d7   : > { %v1192_v43 = vpop.f32.mrf.mxu0  ;;  %v1281_v44 = vpop.f32.mrf.mxu1 }
 0x1d8   : > { %v1193_v45 = vadd.f32 %v1192_v43, %v3223_v48  ;;  %v1282_v46 = vadd.f32 %v1281_v44, %v3225_v49 }
 0x1da   : > { %v1354_v50 = vmax.f32 %v1193_v45, 0.0  ;;  %v1355_v51 = vmax.f32 %v1282_v46, 0.0 }
 0x1dc   : > { %v1402_v52 = vpack.c.bf16 %v1354_v50, %v1352_v47  ;;  %v1403_v53 = vpack.c.bf16 %v1355_v51, %v1353_v39 }
 0x1de   : > { %1595 = vmatmul.bf16.gmra.mxu2 %v1402_v52  ;;  %1684 = vmatmul.bf16.gmra.mxu3 %v1403_v53 }
 0x1df   : > { %v1195_v54 = vpop.f32.mrf.mxu0  ;;  %v1284_v55 = vpop.f32.mrf.mxu1 }
 0x1e0   : > { %v1196_v56 = vadd.f32 %v1195_v54, %v3223_v48  ;;  %v1285_v57 = vadd.f32 %v1284_v55, %v3225_v49 }
 0x1e2   : > { %v1356_v62 = vmax.f32 %v1196_v56, 0.0  ;;  %v1357_v63 = vmax.f32 %v1285_v57, 0.0 }
 0x1e7   : > { %v1197_v58 = vpop.f32.mrf.mxu0  ;;  %v1286_v59 = vpop.f32.mrf.mxu1 }
 0x1e8   : > { %v1198_v60 = vadd.f32 %v1197_v58, %v3223_v48  ;;  %v1287_v61 = vadd.f32 %v1286_v59, %v3225_v49 }
 0x1ea   : > { %v1358_v0 = vmax.f32 %v1198_v60, 0.0  ;;  %v1359_v1 = vmax.f32 %v1287_v61, 0.0 }
 0x1ec   : > { %v1404_v2 = vpack.c.bf16 %v1358_v0, %v1356_v62  ;;  %v1405_v3 = vpack.c.bf16 %v1359_v1, %v1357_v63 }
 0x1ee   : > { %1600 = vmatmul.bf16.gmra.mxu2 %v1404_v2  ;;  %1689 = vmatmul.bf16.gmra.mxu3 %v1405_v3 }
 0x1ef   : > { %v1200_v5 = vpop.f32.mrf.mxu0  ;;  %v1289_v6 = vpop.f32.mrf.mxu1 }
 0x1f0   : > { %v1201_v11 = vadd.f32 %v1200_v5, %v3223_v48  ;;  %v1290_v12 = vadd.f32 %v1289_v6, %v3225_v49 }
 0x1f1   : > { %v1561_v7 = vpop.f32.mrf.mxu2  ;;  %v1650_v8 = vpop.f32.mrf.mxu3 }
 0x1f2   : > { %v1562_v9 = vadd.f32 %v3322_v4, %v1561_v7  ;;  %v1360_v18 = vmax.f32 %v1201_v11, 0.0  ;;  %v1361_v21 = vmax.f32 %v1290_v12, 0.0 }
 0x1f4   : > { %v1651_v10 = vadd.f32 %v1650_v8, %v1562_v9 }
 0x1f6   : > { %v3330_v13 = vsel %vm1730_vm0, %v1651_v10, -inf }
 0x1f7   : > { %1763 = vmax.xlane.f32.xlu1 %v3330_v13  ;;  %v1202_v14 = vpop.f32.mrf.mxu0  ;;  %v1291_v15 = vpop.f32.mrf.mxu1 }
 0x1f8   : > { %v1203_v16 = vadd.f32 %v1202_v14, %v3223_v48  ;;  %v1292_v17 = vadd.f32 %v1291_v15, %v3225_v49 }
 0x1f9   : > { %v1563_v19 = vpop.f32.mrf.mxu2  ;;  %v1652_v20 = vpop.f32.mrf.mxu3 }
 0x1fa   : > { %v1362_v22 = vmax.f32 %v1203_v16, 0.0  ;;  %v1363_v23 = vmax.f32 %v1292_v17, 0.0  ;;  %v1564_v24 = vadd.f32 %v3322_v4, %v1563_v19 }
 0x1fc   : > { %v1653_v25 = vadd.f32 %v1652_v20, %v1564_v24  ;;  %v1406_v26 = vpack.c.bf16 %v1362_v22, %v1360_v18  ;;  %v1407_v27 = vpack.c.bf16 %v1363_v23, %v1361_v21 }
 0x1fe   : > { %1605 = vmatmul.bf16.gmra.mxu2 %v1406_v26  ;;  %1694 = vmatmul.bf16.gmra.mxu3 %v1407_v27  ;;  %v3338_v28 = vsel %vm1730_vm0, %v1653_v25, -inf }
 0x1ff   : > { %1765 = vmax.xlane.f32.xlu2 %v3338_v28  ;;  %v1205_v29 = vpop.f32.mrf.mxu0  ;;  %v1294_v30 = vpop.f32.mrf.mxu1 }
 0x200   : > { %v1206_v36 = vadd.f32 %v1205_v29, %v3223_v48  ;;  %v1295_v37 = vadd.f32 %v1294_v30, %v3225_v49 }
 0x201   : > { %v1566_v31 = vpop.f32.mrf.mxu2  ;;  %v1655_v32 = vpop.f32.mrf.mxu3 }
 0x202   : > { %v1567_v34 = vadd.f32 %v3322_v4, %v1566_v31  ;;  %v1364_v44 = vmax.f32 %v1206_v36, 0.0  ;;  %v1365_v47 = vmax.f32 %v1295_v37, 0.0 }
 0x204   : > { %v1656_v35 = vadd.f32 %v1655_v32, %v1567_v34 }
 0x206   : > { %v3346_v38 = vsel %vm1730_vm0, %v1656_v35, -inf }
 0x207   : > { %1767 = vmax.xlane.f32.xlu0 %v3346_v38  ;;  %v1207_v40 = vpop.f32.mrf.mxu0  ;;  %v1296_v41 = vpop.f32.mrf.mxu1 }
 0x208   : > { %v1208_v42 = vadd.f32 %v1207_v40, %v3223_v48  ;;  %v1297_v43 = vadd.f32 %v1296_v41, %v3225_v49 }
 0x209   : > { %v1568_v45 = vpop.f32.mrf.mxu2  ;;  %v1657_v46 = vpop.f32.mrf.mxu3 }
 0x20a   : > { %v1366_v39 = vmax.f32 %v1208_v42, 0.0  ;;  %v1367_v50 = vmax.f32 %v1297_v43, 0.0  ;;  %v1569_v51 = vadd.f32 %v3322_v4, %v1568_v45 }
 0x20c   : > { %v1658_v52 = vadd.f32 %v1657_v46, %v1569_v51  ;;  %v1408_v53 = vpack.c.bf16 %v1366_v39, %v1364_v44  ;;  %v1409_v54 = vpack.c.bf16 %v1367_v50, %v1365_v47 }
 0x20e   : > { %1610 = vmatmul.bf16.gmra.mxu2 %v1408_v53  ;;  %1699 = vmatmul.bf16.gmra.mxu3 %v1409_v54  ;;  %v3354_v55 = vsel %vm1730_vm0, %v1658_v52, -inf }
 0x20f   : > { %1769 = vmax.xlane.f32.xlu2 %v3354_v55  ;;  %v1210_v56 = vpop.f32.mrf.mxu0  ;;  %v1299_v57 = vpop.f32.mrf.mxu1 }
 0x210   : > { %v1211_v62 = vadd.f32 %v1210_v56, %v3223_v48  ;;  %v1300_v63 = vadd.f32 %v1299_v57, %v3225_v49 }
 0x211   : > { %v1571_v58 = vpop.f32.mrf.mxu2  ;;  %v1660_v59 = vpop.f32.mrf.mxu3 }
 0x212   : > { %v1572_v60 = vadd.f32 %v3322_v4, %v1571_v58  ;;  %v1368_v6 = vmax.f32 %v1211_v62, 0.0  ;;  %v1369_v9 = vmax.f32 %v1300_v63, 0.0 }
 0x214   : > { %v1661_v61 = vadd.f32 %v1660_v59, %v1572_v60 }
 0x216   : > { %v3362_v0 = vsel %vm1730_vm0, %v1661_v61, -inf }
 0x217   : > { %1771 = vmax.xlane.f32.xlu1 %v3362_v0  ;;  %v1212_v1 = vpop.f32.mrf.mxu0  ;;  %v1301_v2 = vpop.f32.mrf.mxu1 }
 0x218   : > { %v1213_v3 = vadd.f32 %v1212_v1, %v3223_v48  ;;  %v1302_v5 = vadd.f32 %v1301_v2, %v3225_v49 }
 0x219   : > { %v1573_v7 = vpop.f32.mrf.mxu2  ;;  %v1662_v8 = vpop.f32.mrf.mxu3 }
 0x21a   : > { %v1370_v10 = vmax.f32 %v1213_v3, 0.0  ;;  %v1371_v11 = vmax.f32 %v1302_v5, 0.0  ;;  %v1574_v12 = vadd.f32 %v3322_v4, %v1573_v7 }
 0x21c   : > { %v1663_v14 = vadd.f32 %v1662_v8, %v1574_v12  ;;  %v1410_v15 = vpack.c.bf16 %v1370_v10, %v1368_v6  ;;  %v1411_v16 = vpack.c.bf16 %v1371_v11, %v1369_v9 }
 0x21e   : > { %1615 = vmatmul.bf16.gmra.mxu2 %v1410_v15  ;;  %1704 = vmatmul.bf16.gmra.mxu3 %v1411_v16  ;;  %v3370_v17 = vsel %vm1730_vm0, %v1663_v14, -inf }
 0x21f   : > { %1773 = vmax.xlane.f32.xlu2 %v3370_v17  ;;  %v1215_v18 = vpop.f32.mrf.mxu0  ;;  %v1304_v19 = vpop.f32.mrf.mxu1 }
 0x220   : > { %v1216_v24 = vadd.f32 %v1215_v18, %v3223_v48  ;;  %v1305_v25 = vadd.f32 %v1304_v19, %v3225_v49 }
 0x221   : > { %v1576_v20 = vpop.f32.mrf.mxu2  ;;  %v1665_v21 = vpop.f32.mrf.mxu3 }
 0x222   : > { %v1577_v22 = vadd.f32 %v3322_v4, %v1576_v20  ;;  %v1372_v32 = vmax.f32 %v1216_v24, 0.0  ;;  %v1373_v36 = vmax.f32 %v1305_v25, 0.0 }
 0x224   : > { %v1666_v23 = vadd.f32 %v1665_v21, %v1577_v22 }
 0x226   : > { %v3378_v26 = vsel %vm1730_vm0, %v1666_v23, -inf }
 0x227   : > { %1775 = vmax.xlane.f32.xlu0 %v3378_v26  ;;  %v1217_v27 = vpop.f32.mrf.mxu0  ;;  %v1306_v29 = vpop.f32.mrf.mxu1 }
 0x228   : > { %v1218_v30 = vadd.f32 %v1217_v27, %v3223_v48  ;;  %v1307_v31 = vadd.f32 %v1306_v29, %v3225_v49 }
 0x229   : > { %v1578_v34 = vpop.f32.mrf.mxu2  ;;  %v1667_v35 = vpop.f32.mrf.mxu3 }
 0x22a   : > { %v1374_v37 = vmax.f32 %v1218_v30, 0.0  ;;  %v1375_v40 = vmax.f32 %v1307_v31, 0.0  ;;  %v1579_v41 = vadd.f32 %v3322_v4, %v1578_v34 }
 0x22c   : > { %v1412_v42 = vpack.c.bf16 %v1374_v37, %v1372_v32  ;;  %v1413_v43 = vpack.c.bf16 %v1375_v40, %v1373_v36  ;;  %v1668_v44 = vadd.f32 %v1667_v35, %v1579_v41 }
 0x22e   : > { %1620 = vmatmul.bf16.gmra.mxu2 %v1412_v42  ;;  %1709 = vmatmul.bf16.gmra.mxu3 %v1413_v43  ;;  %v3386_v45 = vsel %vm1730_vm0, %v1668_v44, -inf }
 0x22f   : > { %1777 = vmax.xlane.f32.xlu1 %v3386_v45  ;;  %v1220_v46 = vpop.f32.mrf.mxu0  ;;  %v1309_v47 = vpop.f32.mrf.mxu1 }
 0x230   : > { %v1221_v53 = vadd.f32 %v1220_v46, %v3223_v48  ;;  %v1310_v54 = vadd.f32 %v1309_v47, %v3225_v49 }
 0x231   : > { %v1581_v39 = vpop.f32.mrf.mxu2  ;;  %v1670_v50 = vpop.f32.mrf.mxu3 }
 0x232   : > { %v1582_v51 = vadd.f32 %v3322_v4, %v1581_v39  ;;  %v1376_v61 = vmax.f32 %v1221_v53, 0.0  ;;  %v1377_v1 = vmax.f32 %v1310_v54, 0.0 }
 0x234   : > { %v1671_v52 = vadd.f32 %v1670_v50, %v1582_v51 }
 0x236   : > { %v3394_v56 = vsel %vm1730_vm0, %v1671_v52, -inf }
 0x237   : > { %1779 = vmax.xlane.f32.xlu2 %v3394_v56  ;;  %v1222_v57 = vpop.f32.mrf.mxu0  ;;  %v1311_v58 = vpop.f32.mrf.mxu1 }
 0x238   : > { %v1223_v59 = vadd.f32 %v1222_v57, %v3223_v48  ;;  %v1312_v60 = vadd.f32 %v1311_v58, %v3225_v49 }
 0x239   : > { %v1583_v62 = vpop.f32.mrf.mxu2  ;;  %v1672_v63 = vpop.f32.mrf.mxu3 }
 0x23a   : > { %v1378_v2 = vmax.f32 %v1223_v59, 0.0  ;;  %v1379_v3 = vmax.f32 %v1312_v60, 0.0  ;;  %v1584_v5 = vadd.f32 %v3322_v4, %v1583_v62 }
 0x23c   : > { %v1414_v6 = vpack.c.bf16 %v1378_v2, %v1376_v61  ;;  %v1415_v7 = vpack.c.bf16 %v1379_v3, %v1377_v1  ;;  %v1673_v8 = vadd.f32 %v1672_v63, %v1584_v5 }
 0x23e   : > { %1625 = vmatmul.bf16.gmra.mxu2 %v1414_v6  ;;  %1714 = vmatmul.bf16.gmra.mxu3 %v1415_v7  ;;  %v3402_v9 = vsel %vm1730_vm0, %v1673_v8, -inf }
 0x23f   : > { %1781 = vmax.xlane.f32.xlu0 %v3402_v9  ;;  %v1225_v10 = vpop.f32.mrf.mxu0  ;;  %v1314_v11 = vpop.f32.mrf.mxu1 }
 0x240   : > { %v1226_v18 = vadd.f32 %v1225_v10, %v3223_v48  ;;  %v1315_v19 = vadd.f32 %v1314_v11, %v3225_v49 }
 0x241   : > { %v1586_v12 = vpop.f32.mrf.mxu2  ;;  %v1675_v14 = vpop.f32.mrf.mxu3 }
 0x242   : > { %v1587_v15 = vadd.f32 %v3322_v4, %v1586_v12  ;;  %v1380_v25 = vmax.f32 %v1226_v18, 0.0  ;;  %v1381_v30 = vmax.f32 %v1315_v19, 0.0 }
 0x244   : > { %v1676_v16 = vadd.f32 %v1675_v14, %v1587_v15 }
 0x246   : > { %v3410_v20 = vsel %vm1730_vm0, %v1676_v16, -inf }
 0x247   : > { %1783 = vmax.xlane.f32.xlu1 %v3410_v20  ;;  %v1227_v21 = vpop.f32.mrf.mxu0  ;;  %v1316_v22 = vpop.f32.mrf.mxu1 }
 0x248   : > { %v1228_v23 = vadd.f32 %v1227_v21, %v3223_v48  ;;  %v1317_v24 = vadd.f32 %v1316_v22, %v3225_v49 }
 0x249   : > { %v1588_v27 = vpop.f32.mrf.mxu2  ;;  %v1677_v29 = vpop.f32.mrf.mxu3 }
 0x24a   : > { %v1382_v31 = vmax.f32 %v1228_v23, 0.0  ;;  %v1383_v32 = vmax.f32 %v1317_v24, 0.0  ;;  %v1589_v34 = vadd.f32 %v3322_v4, %v1588_v27 }
 0x24c   : > { %v1416_v35 = vpack.c.bf16 %v1382_v31, %v1380_v25  ;;  %v1417_v36 = vpack.c.bf16 %v1383_v32, %v1381_v30  ;;  %v1678_v37 = vadd.f32 %v1677_v29, %v1589_v34 }
 0x24e   : > { %1630 = vmatmul.bf16.gmra.mxu2 %v1416_v35  ;;  %1719 = vmatmul.bf16.gmra.mxu3 %v1417_v36  ;;  %v3418_v40 = vsel %vm1730_vm0, %v1678_v37, -inf }
 0x24f   : > { %1785 = vmax.xlane.f32.xlu2 %v3418_v40  ;;  %v1230_v41 = vpop.f32.mrf.mxu0  ;;  %v1319_v42 = vpop.f32.mrf.mxu1 }
 0x250   : > { %v1231_v39 = vadd.f32 %v1230_v41, %v3223_v48  ;;  %v1320_v50 = vadd.f32 %v1319_v42, %v3225_v49 }
 0x251   : > { %v1591_v43 = vpop.f32.mrf.mxu2  ;;  %v1680_v44 = vpop.f32.mrf.mxu3 }
 0x252   : > { %v1592_v46 = vadd.f32 %v3322_v4, %v1591_v43  ;;  %v1384_v58 = vmax.f32 %v1231_v39, 0.0  ;;  %v1385_v61 = vmax.f32 %v1320_v50, 0.0 }
 0x254   : > { %v1681_v47 = vadd.f32 %v1680_v44, %v1592_v46 }
 0x256   : > { %v3426_v51 = vsel %vm1730_vm0, %v1681_v47, -inf }
 0x257   : > { %1787 = vmax.xlane.f32.xlu0 %v3426_v51  ;;  %v1232_v52 = vpop.f32.mrf.mxu0  ;;  %v1321_v53 = vpop.f32.mrf.mxu1 }
 0x258   : > { %v1233_v54 = vadd.f32 %v1232_v52, %v3223_v48  ;;  %v1322_v57 = vadd.f32 %v1321_v53, %v3225_v49 }
 0x259   : > { %v1593_v59 = vpop.f32.mrf.mxu2  ;;  %v1682_v60 = vpop.f32.mrf.mxu3 }
 0x25a   : > { %v1386_v62 = vmax.f32 %v1233_v54, 0.0  ;;  %v1387_v63 = vmax.f32 %v1322_v57, 0.0  ;;  %v1594_v1 = vadd.f32 %v3322_v4, %v1593_v59 }
 0x25c   : > { %v1418_v2 = vpack.c.bf16 %v1386_v62, %v1384_v58  ;;  %v1419_v3 = vpack.c.bf16 %v1387_v63, %v1385_v61  ;;  %v1683_v5 = vadd.f32 %v1682_v60, %v1594_v1 }
 0x25e   : > { %1635 = vmatmul.bf16.gmra.mxu2 %v1418_v2  ;;  %1724 = vmatmul.bf16.gmra.mxu3 %v1419_v3  ;;  %v3434_v6 = vsel %vm1730_vm0, %v1683_v5, -inf }
 0x25f   : > { %1789 = vmax.xlane.f32.xlu1 %v3434_v6 }
 0x261   : > { %v1596_v48 = vpop.f32.mrf.mxu2  ;;  %v1685_v49 = vpop.f32.mrf.mxu3 }
 0x262   : > { %v1597_v7 = vadd.f32 %v3322_v4, %v1596_v48 }
 0x264   : > { %v1686_v8 = vadd.f32 %v1685_v49, %v1597_v7 }
 0x266   : > { %v3440_v10 = vsel %vm1730_vm0, %v1686_v8, -inf }
 0x267   : > { %1791 = vmax.xlane.f32.xlu2 %v3440_v10 }
 0x269   : > { %v1598_v11 = vpop.f32.mrf.mxu2  ;;  %v1687_v12 = vpop.f32.mrf.mxu3 }
 0x26a   : > { %v1599_v14 = vadd.f32 %v3322_v4, %v1598_v11  ;;  %v1764_v15 = vpop.xlane.xlu1 %1763 }
 0x26b   : > { %v3445_v16 = vsub.f32 %v3330_v13, %v1764_v15 }
 0x26c   : > { %v1688_v18 = vadd.f32 %v1687_v12, %v1599_v14 }
 0x26d   : > { %v1859_v19 = vmul.f32 1.442695, %v3445_v16 }
 0x26e   : > { %v3450_v21 = vsel %vm1730_vm0, %v1688_v18, -inf }
 0x26f   : > { %2518 = vpow2.f32 %v1859_v19  ;;  %1793 = vmax.xlane.f32.xlu0 %v3450_v21 }
 0x271   : > { %v1601_v22 = vpop.f32.mrf.mxu2  ;;  %v1690_v23 = vpop.f32.mrf.mxu3 }
 0x272   : > { %v1602_v24 = vadd.f32 %v3322_v4, %v1601_v22  ;;  %v1766_v25 = vpop.xlane.xlu2 %1765 }
 0x273   : > { %v3455_v27 = vsub.f32 %v3338_v28, %v1766_v25 }
 0x274   : > { %v1691_v13 = vadd.f32 %v1690_v23, %v1602_v24 }
 0x275   : > { %v2519_v29 = vpop.eup %2518  ;;  %v1861_v30 = vmul.f32 1.442695, %v3455_v27 }
 0x276   : > { %1923 = vadd.xlane.f32.xlu2 %v2519_v29  ;;  %v3460_v31 = vsel %vm1730_vm0, %v1691_v13, -inf }
 0x277   : > { %2520 = vpow2.f32 %v1861_v30  ;;  %1795 = vmax.xlane.f32.xlu1 %v3460_v31 }
 0x279   : > { %v1603_v32 = vpop.f32.mrf.mxu2  ;;  %v1692_v34 = vpop.f32.mrf.mxu3 }
 0x27a   : > { %v1604_v35 = vadd.f32 %v3322_v4, %v1603_v32  ;;  %v1768_v36 = vpop.xlane.xlu0 %1767 }
 0x27b   : > { %v3465_v28 = vsub.f32 %v3346_v38, %v1768_v36 }
 0x27c   : > { %v1693_v37 = vadd.f32 %v1692_v34, %v1604_v35 }
 0x27d   : > { %v2521_v41 = vpop.eup %2520  ;;  %v1863_v42 = vmul.f32 1.442695, %v3465_v28 }
 0x27e   : > { %1925 = vadd.xlane.f32.xlu0 %v2521_v41  ;;  %v3470_v43 = vsel %vm1730_vm0, %v1693_v37, -inf }
 0x27f   : > { %2522 = vpow2.f32 %v1863_v42  ;;  %1797 = vmax.xlane.f32.xlu2 %v3470_v43 }
 0x281   : > { %v1606_v44 = vpop.f32.mrf.mxu2  ;;  %v1695_v46 = vpop.f32.mrf.mxu3 }
 0x282   : > { %v1607_v47 = vadd.f32 %v3322_v4, %v1606_v44  ;;  %v1770_v39 = vpop.xlane.xlu2 %1769 }
 0x283   : > { %v3475_v38 = vsub.f32 %v3354_v55, %v1770_v39 }
 0x284   : > { %v1696_v50 = vadd.f32 %v1695_v46, %v1607_v47 }
 0x285   : > { %v2523_v52 = vpop.eup %2522  ;;  %v1865_v53 = vmul.f32 1.442695, %v3475_v38 }
 0x286   : > { %1927 = vadd.xlane.f32.xlu1 %v2523_v52  ;;  %v3480_v54 = vsel %vm1730_vm0, %v1696_v50, -inf }
 0x287   : > { %2524 = vpow2.f32 %v1865_v53  ;;  %1799 = vmax.xlane.f32.xlu0 %v3480_v54 }
 0x289   : > { %v1608_v57 = vpop.f32.mrf.mxu2  ;;  %v1697_v58 = vpop.f32.mrf.mxu3 }
 0x28a   : > { %v1609_v59 = vadd.f32 %v3322_v4, %v1608_v57  ;;  %v1772_v60 = vpop.xlane.xlu1 %1771 }
 0x28b   : > { %v3485_v55 = vsub.f32 %v3362_v0, %v1772_v60 }
 0x28c   : > { %v1698_v61 = vadd.f32 %v1697_v58, %v1609_v59 }
 0x28d   : > { %v2525_v62 = vpop.eup %2524  ;;  %v1867_v63 = vmul.f32 1.442695, %v3485_v55 }
 0x28e   : > { %1929 = vadd.xlane.f32.xlu2 %v2525_v62  ;;  %v3490_v1 = vsel %vm1730_vm0, %v1698_v61, -inf }
 0x28f   : > { %2526 = vpow2.f32 %v1867_v63  ;;  %1801 = vmax.xlane.f32.xlu1 %v3490_v1 }
 0x291   : > { %v1611_v2 = vpop.f32.mrf.mxu2  ;;  %v1700_v3 = vpop.f32.mrf.mxu3 }
 0x292   : > { %v1612_v5 = vadd.f32 %v3322_v4, %v1611_v2  ;;  %v1774_v48 = vpop.xlane.xlu2 %1773 }
 0x293   : > { %v3495_v0 = vsub.f32 %v3370_v17, %v1774_v48 }
 0x294   : > { %v1701_v49 = vadd.f32 %v1700_v3, %v1612_v5 }
 0x295   : > { %v2527_v7 = vpop.eup %2526  ;;  %v1869_v8 = vmul.f32 1.442695, %v3495_v0 }
 0x296   : > { %1931 = vadd.xlane.f32.xlu0 %v2527_v7  ;;  %v3500_v11 = vsel %vm1730_vm0, %v1701_v49, -inf }
 0x297   : > { %2528 = vpow2.f32 %v1869_v8  ;;  %1803 = vmax.xlane.f32.xlu2 %v3500_v11 }
 0x299   : > { %v1613_v12 = vpop.f32.mrf.mxu2  ;;  %v1702_v14 = vpop.f32.mrf.mxu3 }
 0x29a   : > { %v1614_v15 = vadd.f32 %v3322_v4, %v1613_v12  ;;  %v1776_v18 = vpop.xlane.xlu0 %1775 }
 0x29b   : > { %v3505_v17 = vsub.f32 %v3378_v26, %v1776_v18 }
 0x29c   : > { %v1703_v19 = vadd.f32 %v1702_v14, %v1614_v15 }
 0x29d   : > { %v2529_v22 = vpop.eup %2528  ;;  %v1871_v23 = vmul.f32 1.442695, %v3505_v17 }
 0x29e   : > { %1933 = vadd.xlane.f32.xlu1 %v2529_v22  ;;  %v3510_v24 = vsel %vm1730_vm0, %v1703_v19, -inf }
 0x29f   : > { %2530 = vpow2.f32 %v1871_v23  ;;  %1805 = vmax.xlane.f32.xlu0 %v3510_v24 }
 0x2a1   : > { %v1616_v25 = vpop.f32.mrf.mxu2  ;;  %v1705_v13 = vpop.f32.mrf.mxu3 }
 0x2a2   : > { %v1617_v29 = vadd.f32 %v3322_v4, %v1616_v25  ;;  %v1778_v30 = vpop.xlane.xlu1 %1777 }
 0x2a3   : > { %v3515_v26 = vsub.f32 %v3386_v45, %v1778_v30 }
 0x2a4   : > { %v1706_v32 = vadd.f32 %v1705_v13, %v1617_v29 }
 0x2a5   : > { %v2531_v34 = vpop.eup %2530  ;;  %v1873_v35 = vmul.f32 1.442695, %v3515_v26 }
 0x2a6   : > { %1935 = vadd.xlane.f32.xlu2 %v2531_v34  ;;  %v3520_v36 = vsel %vm1730_vm0, %v1706_v32, -inf }
 0x2a7   : > { %2532 = vpow2.f32 %v1873_v35  ;;  %1807 = vmax.xlane.f32.xlu1 %v3520_v36 }
 0x2a9   : > { %v1618_v37 = vpop.f32.mrf.mxu2  ;;  %v1707_v41 = vpop.f32.mrf.mxu3 }
 0x2aa   : > { %v1619_v42 = vadd.f32 %v3322_v4, %v1618_v37  ;;  %v1780_v44 = vpop.xlane.xlu2 %1779 }
 0x2ab   : > { %v3525_v45 = vsub.f32 %v3394_v56, %v1780_v44 }
 0x2ac   : > { %v1708_v46 = vadd.f32 %v1707_v41, %v1619_v42 }
 0x2ad   : > { %v2533_v47 = vpop.eup %2532  ;;  %v1875_v39 = vmul.f32 1.442695, %v3525_v45 }
 0x2ae   : > { %1937 = vadd.xlane.f32.xlu0 %v2533_v47  ;;  %v3530_v50 = vsel %vm1730_vm0, %v1708_v46, -inf }
 0x2af   : > { %2534 = vpow2.f32 %v1875_v39  ;;  %1809 = vmax.xlane.f32.xlu2 %v3530_v50 }
 0x2b1   : > { %v1621_v52 = vpop.f32.mrf.mxu2  ;;  %v1710_v53 = vpop.f32.mrf.mxu3 }
 0x2b2   : > { %v1622_v57 = vadd.f32 %v3322_v4, %v1621_v52  ;;  %v1782_v58 = vpop.xlane.xlu0 %1781 }
 0x2b3   : > { %v3535_v56 = vsub.f32 %v3402_v9, %v1782_v58 }
 0x2b4   : > { %v1711_v59 = vadd.f32 %v1710_v53, %v1622_v57 }
 0x2b5   : > { %v2535_v60 = vpop.eup %2534  ;;  %v1877_v61 = vmul.f32 1.442695, %v3535_v56 }
 0x2b6   : > { %1939 = vadd.xlane.f32.xlu1 %v2535_v60  ;;  %v3540_v62 = vsel %vm1730_vm0, %v1711_v59, -inf }
 0x2b7   : > { %2536 = vpow2.f32 %v1877_v61  ;;  %1811 = vmax.xlane.f32.xlu0 %v3540_v62 }
 0x2b9   : > { %v1623_v63 = vpop.f32.mrf.mxu2  ;;  %v1712_v2 = vpop.f32.mrf.mxu3 }
 0x2ba   : > { %v1624_v3 = vadd.f32 %v3322_v4, %v1623_v63  ;;  %v1784_v5 = vpop.xlane.xlu1 %1783 }
 0x2bb   : > { %v3545_v9 = vsub.f32 %v3410_v20, %v1784_v5 }
 0x2bc   : > { %v1713_v48 = vadd.f32 %v1712_v2, %v1624_v3 }
 0x2bd   : > { %v2537_v49 = vpop.eup %2536  ;;  %v1879_v7 = vmul.f32 1.442695, %v3545_v9 }
 0x2be   : > { %1941 = vadd.xlane.f32.xlu2 %v2537_v49  ;;  %v3550_v8 = vsel %vm1730_vm0, %v1713_v48, -inf }
 0x2bf   : > { %2538 = vpow2.f32 %v1879_v7  ;;  %1813 = vmax.xlane.f32.xlu1 %v3550_v8 }
 0x2c1   : > { %v1626_v12 = vpop.f32.mrf.mxu2  ;;  %v1715_v14 = vpop.f32.mrf.mxu3 }
 0x2c2   : > { %v1627_v15 = vadd.f32 %v3322_v4, %v1626_v12  ;;  %v1786_v42 = vpop.xlane.xlu2 %1785 }
 0x2c4   : > { %v1716_v18 = vadd.f32 %v1715_v14, %v1627_v15 }
 0x2c5   : > { %v2539_v19 = vpop.eup %2538 }
 0x2c6   : > { %1943 = vadd.xlane.f32.xlu0 %v2539_v19  ;;  %v3556_v20 = vsel %vm1730_vm0, %v1716_v18, -inf }
 0x2c7   : > { %1815 = vmax.xlane.f32.xlu2 %v3556_v20 }
 0x2c9   : > { %v1628_v22 = vpop.f32.mrf.mxu2  ;;  %v1717_v23 = vpop.f32.mrf.mxu3 }
 0x2ca   : > { %v1629_v25 = vadd.f32 %v3322_v4, %v1628_v22  ;;  %v1788_v37 = vpop.xlane.xlu0 %1787 }
 0x2cb   : > { %v3572_v44 = vsub.f32 %v3426_v51, %v1788_v37 }
 0x2cc   : > { %v1718_v13 = vadd.f32 %v1717_v23, %v1629_v25 }
 0x2cd   : > { %v1883_v52 = vmul.f32 1.442695, %v3572_v44 }
 0x2ce   : > { %v3562_v29 = vsel %vm1730_vm0, %v1718_v13, -inf }
 0x2cf   : > { %1817 = vmax.xlane.f32.xlu0 %v3562_v29  ;;  %2540 = vpow2.f32 %v1883_v52 }
 0x2d1   : > { %v1631_v30 = vpop.f32.mrf.mxu2  ;;  %v1720_v32 = vpop.f32.mrf.mxu3 }
 0x2d2   : > { %v1632_v34 = vadd.f32 %v3322_v4, %v1631_v30  ;;  %v1790_v57 = vpop.xlane.xlu1 %1789 }
 0x2d3   : > { %v3582_v59 = vsub.f32 %v3434_v6, %v1790_v57  ;;  %v3596_v6 = vsub.f32 %v3418_v40, %v1786_v42 }
 0x2d4   : > { %v1721_v35 = vadd.f32 %v1720_v32, %v1632_v34 }
 0x2d5   : > { %v1885_v5 = vmul.f32 1.442695, %v3582_v59  ;;  %v2541_v7 = vpop.eup %2540  ;;  %v1881_v23 = vmul.f32 1.442695, %v3596_v6 }
 0x2d6   : > { %v3568_v41 = vsel %vm1730_vm0, %v1721_v35, -inf }
 0x2d7   : > { %1819 = vmax.xlane.f32.xlu1 %v3568_v41 }
 0x2d9   : > { %v1633_v46 = vpop.f32.mrf.mxu2  ;;  %v1722_v47 = vpop.f32.mrf.mxu3 }
 0x2da   : > { %v1634_v39 = vadd.f32 %v3322_v4, %v1633_v46  ;;  %v1792_v51 = vpop.xlane.xlu2 %1791 }
 0x2dc   : > { %v1723_v53 = vadd.f32 %v1722_v47, %v1634_v39 }
 0x2de   : > { %v3578_v58 = vsel %vm1730_vm0, %v1723_v53, -inf }
 0x2df   : > { %1821 = vmax.xlane.f32.xlu2 %v3578_v58 }
 0x2e1   : > { %v1636_v60 = vpop.f32.mrf.mxu2  ;;  %v1725_v61 = vpop.f32.mrf.mxu3 }
 0x2e2   : > { %v1637_v63 = vadd.f32 %v3322_v4, %v1636_v60  ;;  %v1794_v2 = vpop.xlane.xlu0 %1793 }
 0x2e3   : > { %v3586_v3 = vsub.f32 %v3450_v21, %v1794_v2 }
 0x2e4   : > { %v1726_v48 = vadd.f32 %v1725_v61, %v1637_v63 }
 0x2e5   : > { %v1889_v49 = vmul.f32 1.442695, %v3586_v3 }
 0x2e6   : > { %v3592_v12 = vsel %vm1730_vm0, %v1726_v48, -inf }
 0x2e7   : > { %2542 = vpow2.f32 %v1889_v49  ;;  %1823 = vmax.xlane.f32.xlu0 %v3592_v12  ;;  %1947 = vadd.xlane.f32.xlu2 %v2541_v7 }
 0x2e8   : > { %2544 = vpow2.f32 %v1885_v5 }
 0x2e9   : > { %v1924_v21 = vpop.xlane.xlu2 %1923  ;;  %v1638_v14 = vpop.f32.mrf.mxu2 }
 0x2ea   : > { %2546 = vlog2.f32 %v1924_v21  ;;  %v1639_v15 = vadd.f32 %v3322_v4, %v1638_v14  ;;  %v1796_v18 = vpop.xlane.xlu1 %1795  ;;  %v1727_v19 = vpop.f32.mrf.mxu3 }
 0x2eb   : > { %v3600_v22 = vsub.f32 %v3460_v31, %v1796_v18  ;;  %v3611_v31 = vsub.f32 %v3440_v10, %v1792_v51 }
 0x2ec   : > { %v1728_v25 = vadd.f32 %v1727_v19, %v1639_v15 }
 0x2ed   : > { %v2543_v13 = vpop.eup %2542  ;;  %v1891_v30 = vmul.f32 1.442695, %v3600_v22  ;;  %v1887_v33 = vmul.f32 1.442695, %v3611_v31 }
 0x2ee   : > { %v2545_v32 = vpop.eup %2544  ;;  %v3606_v40 = vsel %vm1730_vm0, %v1728_v25, -inf }
 0x2ef   : > { %2548 = vpow2.f32 %v1891_v30  ;;  %1949 = vadd.xlane.f32.xlu0 %v2545_v32  ;;  %1825 = vmax.xlane.f32.xlu1 %v3606_v40 }
 0x2f0   : > { %v2547_v4 = vpop.eup %2546  ;;  %2550 = vpow2.f32 %v1881_v23  ;;  %1953 = vadd.xlane.f32.xlu2 %v2543_v13 }
 0x2f1   : > { %v1988_v34 = vmul.f32 0.6931472, %v2547_v4  ;;  %v1926_v35 = vpop.xlane.xlu0 %1925 }
 0x2f2   : > { %2552 = vlog2.f32 %v1926_v35  ;;  %v1798_v46 = vpop.xlane.xlu2 %1797 }
 0x2f3   : > { %v2051_v37 = vsub.f32 %v3445_v16, %v1988_v34  ;;  %2554 = vpow2.f32 %v1887_v33  ;;  %v3619_v39 = vsub.f32 %v3470_v43, %v1798_v46 }
 0x2f5   : > { %v2549_v42 = vpop.eup %2548  ;;  %2083 = vst [vmem:[%s3615_s15] sm:$0xff] %v2051_v37  ;;  %v1893_v60 = vmul.f32 1.442695, %v3619_v39 }
 0x2f6   : > { %v2551_v47 = vpop.eup %2550 }
 0x2f7   : > { %1955 = vadd.xlane.f32.xlu0 %v2549_v42  ;;  %1945 = vadd.xlane.f32.xlu1 %v2551_v47 }
 0x2f8   : > { %v2553_v10 = vpop.eup %2552 }
 0x2f9   : > { %v1990_v52 = vmul.f32 0.6931472, %v2553_v10  ;;  %v1928_v53 = vpop.xlane.xlu1 %1927  ;;  %v2555_v63 = vpop.eup %2554 }
 0x2fa   : > { %2556 = vlog2.f32 %v1928_v53  ;;  %v1800_v16 = vpop.xlane.xlu0 %1799 }
 0x2fb   : > { %v2052_v57 = vsub.f32 %v3455_v27, %v1990_v52  ;;  %v3623_v51 = vsub.f32 %v3480_v54, %v1800_v16 }
 0x2fd   : > { %2084 = vst [vmem:[%s3615_s15 + $0x8] sm:$0xff] %v2052_v57  ;;  %v1895_v61 = vmul.f32 1.442695, %v3623_v51 }
 0x2ff   : > { %2558 = vpow2.f32 %v1895_v61  ;;  %1951 = vadd.xlane.f32.xlu1 %v2555_v63 }
 0x300   : > { %v2557_v43 = vpop.eup %2556  ;;  %2560 = vpow2.f32 %v1893_v60 }
 0x301   : > { %v1992_v2 = vmul.f32 0.6931472, %v2557_v43  ;;  %v1930_v5 = vpop.xlane.xlu2 %1929 }
 0x302   : > { %2562 = vlog2.f32 %v1930_v5  ;;  %v1802_v48 = vpop.xlane.xlu1 %1801 }
 0x303   : > { %v2053_v27 = vsub.f32 %v3465_v28, %v1992_v2  ;;  %v3630_v54 = vsub.f32 %v3490_v1, %v1802_v48 }
 0x305   : > { %v2559_v49 = vpop.eup %2558  ;;  %2085 = vst [vmem:[%s3615_s15 + $0x10] sm:$0xff] %v2053_v27  ;;  %v1897_v7 = vmul.f32 1.442695, %v3630_v54 }
 0x306   : > { %v2561_v21 = vpop.eup %2560  ;;  %1959 = vadd.xlane.f32.xlu2 %v2559_v49 }
 0x307   : > { %2564 = vpow2.f32 %v1897_v7  ;;  %1957 = vadd.xlane.f32.xlu1 %v2561_v21 }
 0x308   : > { %v2563_v14 = vpop.eup %2562 }
 0x309   : > { %v1994_v15 = vmul.f32 0.6931472, %v2563_v14  ;;  %v1932_v18 = vpop.xlane.xlu0 %1931 }
 0x30a   : > { %2566 = vlog2.f32 %v1932_v18  ;;  %v1804_v19 = vpop.xlane.xlu2 %1803 }
 0x30b   : > { %v2054_v28 = vsub.f32 %v3475_v38, %v1994_v15  ;;  %v3636_v1 = vsub.f32 %v3500_v11, %v1804_v19 }
 0x30d   : > { %v2565_v23 = vpop.eup %2564  ;;  %2086 = vst [vmem:[%s3615_s15 + $0x18] sm:$0xff] %v2054_v28  ;;  %v1899_v25 = vmul.f32 1.442695, %v3636_v1 }
 0x30e   : > { %1961 = vadd.xlane.f32.xlu0 %v2565_v23 }
 0x30f   : > { %2568 = vpow2.f32 %v1899_v25 }
 0x310   : > { %v2567_v13 = vpop.eup %2566 }
 0x311   : > { %v1996_v30 = vmul.f32 0.6931472, %v2567_v13  ;;  %v1934_v32 = vpop.xlane.xlu1 %1933 }
 0x312   : > { %2570 = vlog2.f32 %v1934_v32  ;;  %v1806_v4 = vpop.xlane.xlu0 %1805 }
 0x313   : > { %v2055_v34 = vsub.f32 %v3485_v55, %v1996_v30  ;;  %v3642_v35 = vsub.f32 %v3510_v24, %v1806_v4 }
 0x315   : > { %v2569_v38 = vpop.eup %2568  ;;  %2087 = vst [vmem:[%s3615_s15 + $0x20] sm:$0xff] %v2055_v34  ;;  %v1901_v11 = vmul.f32 1.442695, %v3642_v35 }
 0x316   : > { %1963 = vadd.xlane.f32.xlu1 %v2569_v38 }
 0x317   : > { %2572 = vpow2.f32 %v1901_v11 }
 0x318   : > { %v2571_v37 = vpop.eup %2570 }
 0x319   : > { %v1998_v33 = vmul.f32 0.6931472, %v2571_v37  ;;  %v1936_v42 = vpop.xlane.xlu2 %1935 }
 0x31a   : > { %2574 = vlog2.f32 %v1936_v42  ;;  %v1808_v46 = vpop.xlane.xlu1 %1807 }
 0x31b   : > { %v2056_v47 = vsub.f32 %v3495_v0, %v1998_v33  ;;  %v3648_v10 = vsub.f32 %v3520_v36, %v1808_v46 }
 0x31d   : > { %v2573_v55 = vpop.eup %2572  ;;  %2088 = vst [vmem:[%s3615_s15 + $0x28] sm:$0xff] %v2056_v47  ;;  %v1903_v24 = vmul.f32 1.442695, %v3648_v10 }
 0x31e   : > { %1965 = vadd.xlane.f32.xlu2 %v2573_v55 }
 0x31f   : > { %2576 = vpow2.f32 %v1903_v24 }
 0x320   : > { %v2575_v52 = vpop.eup %2574 }
 0x321   : > { %v2000_v53 = vmul.f32 0.6931472, %v2575_v52  ;;  %v1938_v16 = vpop.xlane.xlu0 %1937 }
 0x322   : > { %2578 = vlog2.f32 %v1938_v16  ;;  %v1810_v57 = vpop.xlane.xlu2 %1809 }
 0x323   : > { %v2057_v60 = vsub.f32 %v3505_v17, %v2000_v53  ;;  %v3654_v61 = vsub.f32 %v3530_v50, %v1810_v57 }
 0x325   : > { %v2577_v0 = vpop.eup %2576  ;;  %2089 = vst [vmem:[%s3615_s15 + $0x30] sm:$0xff] %v2057_v60  ;;  %v1905_v36 = vmul.f32 1.442695, %v3654_v61 }
 0x326   : > { %1967 = vadd.xlane.f32.xlu0 %v2577_v0 }
 0x327   : > { %2580 = vpow2.f32 %v1905_v36 }
 0x328   : > { %v2579_v63 = vpop.eup %2578 }
 0x329   : > { %v2002_v43 = vmul.f32 0.6931472, %v2579_v63  ;;  %v1940_v2 = vpop.xlane.xlu1 %1939 }
 0x32a   : > { %2582 = vlog2.f32 %v1940_v2  ;;  %v1812_v5 = vpop.xlane.xlu0 %1811 }
 0x32b   : > { %v2058_v48 = vsub.f32 %v3515_v26, %v2002_v43  ;;  %v3660_v27 = vsub.f32 %v3540_v62, %v1812_v5 }
 0x32d   : > { %v2581_v17 = vpop.eup %2580  ;;  %2090 = vst [vmem:[%s3615_s15 + $0x38] sm:$0xff] %v2058_v48  ;;  %v1907_v50 = vmul.f32 1.442695, %v3660_v27 }
 0x32e   : > { %1969 = vadd.xlane.f32.xlu1 %v2581_v17 }
 0x32f   : > { %2584 = vpow2.f32 %v1907_v50 }
 0x330   : > { %v2583_v49 = vpop.eup %2582 }
 0x331   : > { %v2004_v7 = vmul.f32 0.6931472, %v2583_v49  ;;  %v1942_v21 = vpop.xlane.xlu2 %1941 }
 0x332   : > { %2586 = vlog2.f32 %v1942_v21  ;;  %v1814_v14 = vpop.xlane.xlu1 %1813 }
 0x333   : > { %v2059_v15 = vsub.f32 %v3525_v45, %v2004_v7  ;;  %v3666_v18 = vsub.f32 %v3550_v8, %v1814_v14 }
 0x335   : > { %v2585_v26 = vpop.eup %2584  ;;  %2091 = vst [vmem:[%s3615_s15 + $0x40] sm:$0xff] %v2059_v15  ;;  %v1909_v62 = vmul.f32 1.442695, %v3666_v18 }
 0x336   : > { %1971 = vadd.xlane.f32.xlu2 %v2585_v26 }
 0x337   : > { %2588 = vpow2.f32 %v1909_v62 }
 0x338   : > { %v2587_v19 = vpop.eup %2586 }
 0x339   : > { %v2006_v28 = vmul.f32 0.6931472, %v2587_v19  ;;  %v1944_v23 = vpop.xlane.xlu0 %1943 }
 0x33a   : > { %2590 = vlog2.f32 %v1944_v23  ;;  %v1816_v25 = vpop.xlane.xlu2 %1815 }
 0x33b   : > { %v2060_v13 = vsub.f32 %v3535_v56, %v2006_v28  ;;  %v3672_v30 = vsub.f32 %v3556_v20, %v1816_v25 }
 0x33d   : > { %v2589_v45 = vpop.eup %2588  ;;  %2092 = vst [vmem:[%s3615_s15 + $0x48] sm:$0xff] %v2060_v13  ;;  %v1911_v8 = vmul.f32 1.442695, %v3672_v30 }
 0x33e   : > { %1973 = vadd.xlane.f32.xlu0 %v2589_v45 }
 0x33f   : > { %2592 = vpow2.f32 %v1911_v8 }
 0x340   : > { %v2591_v32 = vpop.eup %2590 }
 0x341   : > { %v2008_v4 = vmul.f32 0.6931472, %v2591_v32 }
 0x342   : > { %v1818_v34 = vpop.xlane.xlu0 %1817 }
 0x343   : > { %v2061_v38 = vsub.f32 %v3545_v9, %v2008_v4  ;;  %v3678_v11 = vsub.f32 %v3562_v29, %v1818_v34 }
 0x345   : > { %v2593_v37 = vpop.eup %2592  ;;  %2093 = vst [vmem:[%s3615_s15 + $0x50] sm:$0xff] %v2061_v38  ;;  %v1913_v56 = vmul.f32 1.442695, %v3678_v11 }
 0x346   : > { %1975 = vadd.xlane.f32.xlu1 %v2593_v37 }
 0x347   : > { %2594 = vpow2.f32 %v1913_v56 }
 0x34a   : > { %v1820_v20 = vpop.xlane.xlu1 %1819 }
 0x34b   : > { %v3683_v33 = vsub.f32 %v3568_v41, %v1820_v20 }
 0x34d   : > { %v2595_v42 = vpop.eup %2594  ;;  %v1915_v46 = vmul.f32 1.442695, %v3683_v33 }
 0x34e   : > { %1977 = vadd.xlane.f32.xlu2 %v2595_v42 }
 0x34f   : > { %2596 = vpow2.f32 %v1915_v46 }
 0x352   : > { %v1822_v47 = vpop.xlane.xlu2 %1821 }
 0x353   : > { %v3687_v9 = vsub.f32 %v3578_v58, %v1822_v47 }
 0x355   : > { %v2597_v29 = vpop.eup %2596  ;;  %v1917_v55 = vmul.f32 1.442695, %v3687_v9 }
 0x356   : > { %1979 = vadd.xlane.f32.xlu0 %v2597_v29 }
 0x357   : > { %2598 = vpow2.f32 %v1917_v55 }
 0x35a   : > { %v1948_v24 = vpop.xlane.xlu2 %1947  ;;  %v1824_v52 = vpop.xlane.xlu0 %1823 }
 0x35b   : > { %2600 = vlog2.f32 %v1948_v24  ;;  %v3691_v41 = vsub.f32 %v3592_v12, %v1824_v52 }
 0x35d   : > { %v2599_v53 = vpop.eup %2598  ;;  %v1919_v16 = vmul.f32 1.442695, %v3691_v41 }
 0x35e   : > { %1981 = vadd.xlane.f32.xlu1 %v2599_v53 }
 0x35f   : > { %2602 = vpow2.f32 %v1919_v16 }
 0x361   : > { %v2601_v57 = vpop.eup %2600 }
 0x362   : > { %v2012_v58 = vmul.f32 0.6931472, %v2601_v57  ;;  %v1826_v60 = vpop.xlane.xlu1 %1825  ;;  %v1950_v0 = vpop.xlane.xlu0 %1949 }
 0x363   : > { %v3695_v36 = vsub.f32 %v3606_v40, %v1826_v60  ;;  %v1954_v63 = vpop.xlane.xlu2 %1953  ;;  %2604 = vlog2.f32 %v1950_v0 }
 0x364   : > { %v2063_v43 = vsub.f32 %v3572_v44, %v2012_v58  ;;  %2606 = vlog2.f32 %v1954_v63 }
 0x365   : > { %v2603_v12 = vpop.eup %2602  ;;  %v1921_v2 = vmul.f32 1.442695, %v3695_v36 }
 0x366   : > { %2095 = vst [vmem:[%s3615_s15 + $0x60] sm:$0xff] %v2063_v43  ;;  %1983 = vadd.xlane.f32.xlu2 %v2603_v12 }
 0x367   : > { %2608 = vpow2.f32 %v1921_v2 }
 0x369   : > { %v2605_v5 = vpop.eup %2604 }
 0x36a   : > { %v2607_v48 = vpop.eup %2606  ;;  %v2014_v17 = vmul.f32 0.6931472, %v2605_v5  ;;  %v1946_v50 = vpop.xlane.xlu1 %1945 }
 0x36b   : > { %v1956_v49 = vpop.xlane.xlu0 %1955  ;;  %v2018_v40 = vmul.f32 0.6931472, %v2607_v48  ;;  %2610 = vlog2.f32 %v1946_v50 }
 0x36c   : > { %v2064_v7 = vsub.f32 %v3582_v59, %v2014_v17  ;;  %2612 = vlog2.f32 %v1956_v49 }
 0x36d   : > { %v2609_v44 = vpop.eup %2608  ;;  %v2066_v21 = vsub.f32 %v3586_v3, %v2018_v40 }
 0x36e   : > { %2096 = vst [vmem:[%s3615_s15 + $0x68] sm:$0xff] %v2064_v7  ;;  %1985 = vadd.xlane.f32.xlu0 %v2609_v44 }
 0x36f   : > { %2098 = vst [vmem:[%s3615_s15 + $0x78] sm:$0xff] %v2066_v21 }
 0x371   : > { %v2611_v14 = vpop.eup %2610 }
 0x372   : > { %v2613_v15 = vpop.eup %2612  ;;  %v2010_v26 = vmul.f32 0.6931472, %v2611_v14  ;;  %v1952_v62 = vpop.xlane.xlu1 %1951 }
 0x373   : > { %v2020_v19 = vmul.f32 0.6931472, %v2613_v15  ;;  %2614 = vlog2.f32 %v1952_v62 }
 0x374   : > { %v2062_v28 = vsub.f32 %v3596_v6, %v2010_v26 }
 0x375   : > { %v2067_v23 = vsub.f32 %v3600_v22, %v2020_v19 }
 0x376   : > { %2094 = vst [vmem:[%s3615_s15 + $0x58] sm:$0xff] %v2062_v28 }
 0x377   : > { %2099 = vst [vmem:[%s3615_s15 + $0x80] sm:$0xff] %v2067_v23 }
 0x379   : > { %v2615_v59 = vpop.eup %2614  ;;  %v1960_v25 = vpop.xlane.xlu2 %1959 }
 0x37a   : > { %v2016_v3 = vmul.f32 0.6931472, %v2615_v59  ;;  %2616 = vlog2.f32 %v1960_v25  ;;  %v1958_v13 = vpop.xlane.xlu1 %1957 }
 0x37b   : > { %2618 = vlog2.f32 %v1958_v13 }
 0x37c   : > { %v2065_v45 = vsub.f32 %v3611_v31, %v2016_v3 }
 0x37e   : > { %2097 = vst [vmem:[%s3615_s15 + $0x70] sm:$0xff] %v2065_v45 }
 0x380   : > { %v2617_v8 = vpop.eup %2616 }
 0x381   : > { %v2619_v32 = vpop.eup %2618  ;;  %v2024_v4 = vmul.f32 0.6931472, %v2617_v8  ;;  %v1962_v6 = vpop.xlane.xlu0 %1961 }
 0x382   : > { %v2022_v34 = vmul.f32 0.6931472, %v2619_v32  ;;  %2620 = vlog2.f32 %v1962_v6 }
 0x383   : > { %v2069_v22 = vsub.f32 %v3623_v51, %v2024_v4 }
 0x384   : > { %v2068_v38 = vsub.f32 %v3619_v39, %v2022_v34 }
 0x385   : > { %2101 = vst [vmem:[%s3615_s15 + $0x90] sm:$0xff] %v2069_v22 }
 0x386   : > { %2100 = vst [vmem:[%s3615_s15 + $0x88] sm:$0xff] %v2068_v38 }
 0x388   : > { %v2621_v37 = vpop.eup %2620 }
 0x389   : > { %v2026_v56 = vmul.f32 0.6931472, %v2621_v37  ;;  %v1964_v20 = vpop.xlane.xlu1 %1963 }
 0x38a   : > { %2622 = vlog2.f32 %v1964_v20 }
 0x38b   : > { %v2070_v31 = vsub.f32 %v3630_v54, %v2026_v56 }
 0x38d   : > { %2102 = vst [vmem:[%s3615_s15 + $0x98] sm:$0xff] %v2070_v31 }
 0x390   : > { %v2623_v42 = vpop.eup %2622 }
 0x391   : > { %v2028_v46 = vmul.f32 0.6931472, %v2623_v42  ;;  %v1966_v47 = vpop.xlane.xlu2 %1965 }
 0x392   : > { %2624 = vlog2.f32 %v1966_v47 }
 0x393   : > { %v2071_v29 = vsub.f32 %v3636_v1, %v2028_v46 }
 0x395   : > { %2103 = vst [vmem:[%s3615_s15 + $0xa0] sm:$0xff] %v2071_v29 }
 0x398   : > { %v2625_v51 = vpop.eup %2624 }
 0x399   : > { %v2030_v39 = vmul.f32 0.6931472, %v2625_v51  ;;  %v1968_v55 = vpop.xlane.xlu0 %1967 }
 0x39a   : > { %2626 = vlog2.f32 %v1968_v55 }
 0x39b   : > { %v2072_v24 = vsub.f32 %v3642_v35, %v2030_v39 }
 0x39d   : > { %2104 = vst [vmem:[%s3615_s15 + $0xa8] sm:$0xff] %v2072_v24 }
 0x3a0   : > { %v2627_v52 = vpop.eup %2626 }
 0x3a1   : > { %v2032_v53 = vmul.f32 0.6931472, %v2627_v52  ;;  %v1970_v54 = vpop.xlane.xlu1 %1969 }
 0x3a2   : > { %2628 = vlog2.f32 %v1970_v54 }
 0x3a3   : > { %v2073_v16 = vsub.f32 %v3648_v10, %v2032_v53 }
 0x3a5   : > { %2105 = vst [vmem:[%s3615_s15 + $0xb0] sm:$0xff] %v2073_v16 }
 0x3a8   : > { %v2629_v57 = vpop.eup %2628 }
 0x3a9   : > { %v2034_v58 = vmul.f32 0.6931472, %v2629_v57  ;;  %v1972_v1 = vpop.xlane.xlu2 %1971 }
 0x3aa   : > { %2630 = vlog2.f32 %v1972_v1 }
 0x3ab   : > { %v2074_v60 = vsub.f32 %v3654_v61, %v2034_v58 }
 0x3ad   : > { %2106 = vst [vmem:[%s3615_s15 + $0xb8] sm:$0xff] %v2074_v60 }
 0x3b0   : > { %v2631_v0 = vpop.eup %2630 }
 0x3b1   : > { %v2036_v63 = vmul.f32 0.6931472, %v2631_v0  ;;  %v1974_v35 = vpop.xlane.xlu0 %1973 }
 0x3b2   : > { %2632 = vlog2.f32 %v1974_v35 }
 0x3b3   : > { %v2075_v43 = vsub.f32 %v3660_v27, %v2036_v63 }
 0x3b5   : > { %2107 = vst [vmem:[%s3615_s15 + $0xc0] sm:$0xff] %v2075_v43 }
 0x3b8   : > { %v2633_v12 = vpop.eup %2632 }
 0x3b9   : > { %v2038_v2 = vmul.f32 0.6931472, %v2633_v12  ;;  %v1976_v10 = vpop.xlane.xlu1 %1975 }
 0x3ba   : > { %2634 = vlog2.f32 %v1976_v10 }
 0x3bb   : > { %v2076_v5 = vsub.f32 %v3666_v18, %v2038_v2 }
 0x3bd   : > { %2108 = vst [vmem:[%s3615_s15 + $0xc8] sm:$0xff] %v2076_v5 }
 0x3c0   : > { %v2635_v48 = vpop.eup %2634 }
 0x3c1   : > { %v2040_v17 = vmul.f32 0.6931472, %v2635_v48  ;;  %v1978_v61 = vpop.xlane.xlu2 %1977 }
 0x3c2   : > { %2636 = vlog2.f32 %v1978_v61 }
 0x3c3   : > { %v2077_v50 = vsub.f32 %v3672_v30, %v2040_v17 }
 0x3c5   : > { %2109 = vst [vmem:[%s3615_s15 + $0xd0] sm:$0xff] %v2077_v50 }
 0x3c8   : > { %v2637_v49 = vpop.eup %2636 }
 0x3c9   : > { %v2042_v40 = vmul.f32 0.6931472, %v2637_v49  ;;  %v1980_v27 = vpop.xlane.xlu0 %1979 }
 0x3ca   : > { %2638 = vlog2.f32 %v1980_v27 }
 0x3cb   : > { %v2078_v7 = vsub.f32 %v3678_v11, %v2042_v40 }
 0x3cd   : > { %2110 = vst [vmem:[%s3615_s15 + $0xd8] sm:$0xff] %v2078_v7 }
 0x3d0   : > { %v2639_v44 = vpop.eup %2638 }
 0x3d1   : > { %v2044_v18 = vmul.f32 0.6931472, %v2639_v44  ;;  %v1982_v21 = vpop.xlane.xlu1 %1981 }
 0x3d2   : > { %2640 = vlog2.f32 %v1982_v21 }
 0x3d3   : > { %v2079_v14 = vsub.f32 %v3683_v33, %v2044_v18 }
 0x3d5   : > { %2111 = vst [vmem:[%s3615_s15 + $0xe0] sm:$0xff] %v2079_v14 }
 0x3d8   : > { %v2641_v30 = vpop.eup %2640 }
 0x3d9   : > { %v2046_v15 = vmul.f32 0.6931472, %v2641_v30  ;;  %v1984_v26 = vpop.xlane.xlu2 %1983 }
 0x3da   : > { %2642 = vlog2.f32 %v1984_v26 }
 0x3db   : > { %v2080_v62 = vsub.f32 %v3687_v9, %v2046_v15 }
 0x3dd   : > { %2112 = vst [vmem:[%s3615_s15 + $0xe8] sm:$0xff] %v2080_v62 }
 0x3e0   : > { %v2643_v11 = vpop.eup %2642 }
 0x3e1   : > { %v2048_v19 = vmul.f32 0.6931472, %v2643_v11  ;;  %v1986_v28 = vpop.xlane.xlu0 %1985 }
 0x3e2   : > { %2644 = vlog2.f32 %v1986_v28 }
 0x3e3   : > { %v2081_v23 = vsub.f32 %v3691_v41, %v2048_v19 }
 0x3e5   : > { %2113 = vst [vmem:[%s3615_s15 + $0xf0] sm:$0xff] %v2081_v23 }
 0x3e8   : > { %v2645_v33 = vpop.eup %2644 }
 0x3e9   : > { %v2050_v9 = vmul.f32 0.6931472, %v2645_v33 }
 0x3eb   : > { %v2082_v59 = vsub.f32 %v3695_v36, %v2050_v9 }
 0x3ed   : > { %2114 = vst [vmem:[%s3615_s15 + $0xf8] sm:$0xff] %v2082_v59 }
 0x3ee   : > { %2673 = shalt.err (!%p2670_p5)
}
 0x3ef   : > { %s2712_s12 = smov 128   ;;  %s2713_s13 = smov 8  }
 0x3f0   : > { %2471 = dma.vmem_to_hbm [thread:$0]  (%p2782_p6), %s2129_s26, 4096, %s2131_s30, %s2116_s6, %s2712_s12, %s2712_s12, %s2713_s13  }
 0x3f1 PF: > { %s2145_s15 = sand.u32 1, %s2696_s18   ;;  %p2474_p7 = pnand %p2201_p9, %p2786_p8 }
 0x3f2   : > { %s2146_s16 = scalar_lea.sflag [#allocation4], %s2145_s15 }
 0x3f3   : > { %p2475_p10 = pneg %p2474_p7 }
 0x3f5   : > { %2691 = dma.done.wait (%p2475_p10), %s2146_s16, 4096  }
 0x3f6   : > { %2693 = vsyncadd (%p2475_p10), %s2146_s16, 4294963200  ;;  %p15_p11 = scmp.ge.s32.totalorder %s2767_s24, 4   ;;  %s3783_s18 = smov %s2700_s19 }
 0x3f7   : > { %s3784_s19 = smov %s2704_s20  ;;  %s3785_s20 = smov %s2780_s27 }
 0x3f8   : > { %s3786_s21 = smov %s2767_s24  ;;  %17 = sbr.rel (!%p15_p11) target bundleno = 3 (0x3), region = 119 }
 0x3fd   :  { %2152 = vsyncpa [#allocation4], 1 }
 0x3fe   :  { %2154 = vsyncpa [#allocation4 + $0x1], 1 }

</bundles_post_ra>
